<compile_context>
chip_gen: v7x
topology: tpu7x:2x2x1
jax: 0.10.0
libtpu: 0.0.40
codegen_flags: <defaults>
</compile_context>

<pallas_src>
import jax
import jax.numpy as jnp
from jax.experimental import pallas as pl
from jax.experimental.pallas import tpu as pltpu

# Set to jnp.bfloat16 on v6e/v7x for ~2x weight/activation VMEM+DMA savings on
# the non-recurrent matmuls (hoisted layer-0 projection and fc).  Loosen the
# test tolerance to ~1e-2 if you do.  W_hh (the compounding recurrence) stays
# float32 either way.
NONRECURRENT_DTYPE = jnp.float32


def _round_up(n, m):
    return ((n + m - 1) // m) * m


# ----------------------------- Fused RNN kernel ------------------------------
def make_fused_rnn_kernel(num_layers, seq_len, b_pad):
    """num_layers stacked tanh-RNN layers + final Linear, wavefront schedule."""
    L, S = num_layers, seq_len

    def kernel(*refs):
        n_in = 1 + 3 * L + 2
        x_ref = refs[0]                              # (S*B_pad, I_pad)
        layer_refs = refs[1:1 + 3 * L]               # (wih_t, whh_t, b) per layer
        wfc_ref = refs[1 + 3 * L]                    # (H_pad, O_pad)
        bfc_ref = refs[2 + 3 * L]                    # (1, O_pad)
        out_ref = refs[n_in]                         # (S*B_pad, O_pad)
        z_buf = refs[n_in + 1]                       # (S*B_pad, H_pad) f32

        h_pad = z_buf.shape[1]

        def wih(l):
            return layer_refs[3 * l]

        def whh(l):
            return layer_refs[3 * l + 1]

        def bias(l):
            return layer_refs[3 * l + 2]

        def row_of(t):
            # t may be a Python int (ramp-up/down) or a traced index (steady state).
            if isinstance(t, int):
                return t * b_pad
            return pl.multiple_of(t * b_pad, b_pad)

        # ---- Phase 1: hoisted layer-0 input projection (time-parallel). ----
        # One (S*B_pad, I_pad) x (I_pad, H_pad) MXU matmul; bias broadcast once.
        z_buf[...] = (
            jnp.dot(x_ref[...], wih(0)[...], preferred_element_type=jnp.float32)
            + bias(0)[...]
        )

        # ---- Phase 2: wavefront recurrence over diagonals d = t + l. -------
        def cell(l, t, h_below, h_prev):
            # Pre-activation for layer l at time t.
            if l == 0:
                z_t = z_buf[pl.ds(row_of(t), b_pad), :]
            else:
                z_t = (
                    jnp.dot(h_below, wih(l)[...],
                            preferred_element_type=jnp.float32)
                    + bias(l)[...]
                )
            # W_hh read from VMEM per step (no long-lived vreg tile).
            h_new = jnp.tanh(
                z_t + jnp.dot(h_prev, whh(l)[...],
                              preferred_element_type=jnp.float32))
            if l == L - 1:
                # Last layer's hidden states overwrite rows of z_buf that were
                # already consumed (t <= current layer-0 time), so z_buf doubles
                # as the fc input slab — no second activation buffer.
                z_buf[pl.ds(row_of(t), b_pad), :] = h_new
            return h_new

        def diagonal(d, carry, layers):
            old = list(carry)          # snapshot: all reads from previous diagonal
            new = list(carry)
            for l in layers:
                t = d - l
                new[l] = cell(l, t, old[l - 1] if l > 0 else None, old[l])
            return new

        carry = [jnp.zeros((b_pad, h_pad), jnp.float32) for _ in range(L)]

        # Ramp-up (static): deeper layers not yet active.
        for d in range(L - 1):
            carry = diagonal(d, carry, range(max(0, d - S + 1), min(L, d + 1)))

        # Steady state: all L layers active — the L chains overlap in the bundle.
        if S >= L:
            n_int = S - (L - 1)

            def body(d, c):
                return tuple(diagonal(d, list(c), range(L)))

            carry = list(jax.lax.fori_loop(
                L - 1, S, body, tuple(carry),
                unroll=True if n_int <= 16 else 8))

        # Ramp-down (static): drain the deeper layers.
        for d in range(max(L - 1, S), S + L - 1):
            carry = diagonal(d, carry, range(max(0, d - S + 1), min(L, d + 1)))

        # ---- Phase 3: fused fc — one lane-dense matmul over all rows. ------
        out_ref[...] = (
            jnp.dot(z_buf[...].astype(wfc_ref.dtype), wfc_ref[...],
                    preferred_element_type=jnp.float32)
            + bfc_ref[...]
        ).astype(out_ref.dtype)

    return kernel


# ------------------------------- Full forward --------------------------------
@jax.jit
def rnn_model_forward(x, params):
    """Equivalent of RNNModel.forward: out, _ = rnn(x); out = fc(out).

    x: (S, B, I) float32 -> (S, B, O) float32
    """
    S, B, I = x.shape
    rnn_layers = params["rnn_layers"]
    num_layers = len(rnn_layers)
    H = rnn_layers[0][0].shape[0]
    O = params["w_fc"].shape[0]

    B_pad = _round_up(B, 8)        # f32 sublane multiple
    I_pad = _round_up(I, 128)      # lane-dense feature dims -> unmasked vld/vst
    H_pad = _round_up(H, 128)
    O_pad = _round_up(O, 128)

    # Pad + flatten x to a time-major (S*B_pad, I_pad) slab.  Fine at small S;
    # for long sequences move this behind a time-chunk BlockSpec instead of
    # materializing the padded copy in HBM (matters most on v5e bandwidth).
    x_p = jnp.zeros((S, B_pad, I_pad), jnp.float32).at[:, :B, :I].set(x)
    x_p = x_p.reshape(S * B_pad, I_pad).astype(NONRECURRENT_DTYPE)

    inputs = [x_p]
    for layer, (w_ih, w_hh, b_ih, b_hh) in enumerate(rnn_layers):
        in_sz = I if layer == 0 else H
        in_pad = I_pad if layer == 0 else H_pad
        w_dtype = NONRECURRENT_DTYPE if layer == 0 else jnp.float32
        wih_t = (jnp.zeros((in_pad, H_pad), jnp.float32)
                 .at[:in_sz, :H].set(w_ih.T).astype(w_dtype))
        whh_t = jnp.zeros((H_pad, H_pad), jnp.float32).at[:H, :H].set(w_hh.T)
        b = jnp.zeros((1, H_pad), jnp.float32).at[0, :H].set(b_ih + b_hh)
        inputs += [wih_t, whh_t, b]

    wfc_t = (jnp.zeros((H_pad, O_pad), jnp.float32)
             .at[:H, :O].set(params["w_fc"].T).astype(NONRECURRENT_DTYPE))
    bfc = jnp.zeros((1, O_pad), jnp.float32).at[0, :O].set(params["b_fc"])
    inputs += [wfc_t, bfc]

    kernel = make_fused_rnn_kernel(num_layers, S, B_pad)

    # Scoped-VMEM limit sized from the actual resident set (+2x headroom,
    # never below the default, capped well under physical VMEM).
    in_bytes = sum(int(a.size) * a.dtype.itemsize for a in inputs)
    scratch_bytes = S * B_pad * H_pad * 4
    out_bytes = S * B_pad * O_pad * 4
    vmem_limit = int(min(
        128 << 20,
        max(32 << 20, 2 * (in_bytes + scratch_bytes + out_bytes) + (4 << 20))))

    out_padded = pl.pallas_call(
        kernel,
        out_shape=jax.ShapeDtypeStruct((S * B_pad, O_pad), jnp.float32),
        # Whole-problem-in-VMEM: grid=(), every operand resident (tiny shapes).
        in_specs=[pl.BlockSpec(memory_space=pltpu.MemorySpace.VMEM)] * len(inputs),
        out_specs=pl.BlockSpec(memory_space=pltpu.MemorySpace.VMEM),
        scratch_shapes=[
            pltpu.VMEM((S * B_pad, H_pad), jnp.float32),   # z_buf / hidden slab
        ],
        compiler_params=pltpu.CompilerParams(vmem_limit_bytes=vmem_limit),
    )(*inputs)

    return out_padded.reshape(S, B_pad, O_pad)[:, :B, :O]


# --------------------------- Parameter construction ---------------------------
def init_params(key, input_size, hidden_size, output_size, num_layers):
    k = 1.0 / jnp.sqrt(hidden_size)
    layers = []
    for l in range(num_layers):
        in_sz = input_size if l == 0 else hidden_size
        key, k1, k2, k3, k4 = jax.random.split(key, 5)
        w_ih = jax.random.uniform(k1, (hidden_size, in_sz), jnp.float32, -k, k)
        w_hh = jax.random.uniform(k2, (hidden_size, hidden_size), jnp.float32, -k, k)
        b_ih = jax.random.uniform(k3, (hidden_size,), jnp.float32, -k, k)
        b_hh = jax.random.uniform(k4, (hidden_size,), jnp.float32, -k, k)
        layers.append((w_ih, w_hh, b_ih, b_hh))
    key, k5, k6 = jax.random.split(key, 3)
    kf = 1.0 / jnp.sqrt(hidden_size)
    w_fc = jax.random.uniform(k5, (output_size, hidden_size), jnp.float32, -kf, kf)
    b_fc = jax.random.uniform(k6, (output_size,), jnp.float32, -kf, kf)
    return {"rnn_layers": layers, "w_fc": w_fc, "b_fc": b_fc}


# ------------------------------ Pure-JAX reference ----------------------------
def rnn_model_reference(x, params):
    h_seq = x
    for (w_ih, w_hh, b_ih, b_hh) in params["rnn_layers"]:
        S, B, _ = h_seq.shape
        H = w_ih.shape[0]

        def step(h_prev, x_t, w_ih=w_ih, w_hh=w_hh, b_ih=b_ih, b_hh=b_hh):
            h = jnp.tanh(x_t @ w_ih.T + b_ih + h_prev @ w_hh.T + b_hh)
            return h, h

        _, outs = jax.lax.scan(step, jnp.zeros((B, H), jnp.float32), h_seq)
        h_seq = outs
    return h_seq @ params["w_fc"].T + params["b_fc"]


if __name__ == "__main__":
    SEQ, BATCH = 8, 4
    INPUT_SIZE, HIDDEN_SIZE, OUTPUT_SIZE, NUM_LAYERS = 16, 32, 8, 2

    key = jax.random.PRNGKey(0)
    key, xkey = jax.random.split(key)
    x = jax.random.normal(xkey, (SEQ, BATCH, INPUT_SIZE), jnp.float32)
    params = init_params(key, INPUT_SIZE, HIDDEN_SIZE, OUTPUT_SIZE, NUM_LAYERS)

    out = rnn_model_forward(x, params)
    out = jax.block_until_ready(out)

    ref = rnn_model_reference(x, params)
    assert out.shape == (SEQ, BATCH, OUTPUT_SIZE), out.shape
    assert jnp.allclose(out, ref, atol=2e-5, rtol=2e-5), (
        float(jnp.max(jnp.abs(out - ref)))
    )
    print("KERNEL_OK")
</pallas_src>

<mosaic_0001>
module attributes {stable_mosaic.version = 11 : i64} {
  func.func @kernel(%arg0: memref<64x128xf32, #tpu.memory_space<vmem>>, %arg1: memref<128x128xf32, #tpu.memory_space<vmem>>, %arg2: memref<128x128xf32, #tpu.memory_space<vmem>>, %arg3: memref<1x128xf32, #tpu.memory_space<vmem>>, %arg4: memref<128x128xf32, #tpu.memory_space<vmem>>, %arg5: memref<128x128xf32, #tpu.memory_space<vmem>>, %arg6: memref<1x128xf32, #tpu.memory_space<vmem>>, %arg7: memref<128x128xf32, #tpu.memory_space<vmem>>, %arg8: memref<1x128xf32, #tpu.memory_space<vmem>>, %arg9: memref<64x128xf32, #tpu.memory_space<vmem>>, %arg10: memref<64x128xf32, #tpu.memory_space<vmem>>) attributes {dimension_semantics = [], scalar_prefetch = 0 : i64, scratch_operands = 1 : i64, tpu.core_type = #tpu.core_type<tc>} {
    %c0 = arith.constant 0 : index
    %c0_0 = arith.constant 0 : index
    %0 = vector.load %arg0[%c0, %c0_0] : memref<64x128xf32, #tpu.memory_space<vmem>>, vector<64x128xf32>
    %c0_1 = arith.constant 0 : index
    %c0_2 = arith.constant 0 : index
    %1 = vector.load %arg1[%c0_1, %c0_2] : memref<128x128xf32, #tpu.memory_space<vmem>>, vector<128x128xf32>
    %cst = arith.constant dense<0.000000e+00> : vector<64x128xf32>
    %2 = tpu.matmul %0, %1, %cst {dimension_numbers = #tpu.dot_dimension_numbers<[1], [0], [0], [1], [0, 0, 1, 1], [], []>} : vector<64x128xf32>, vector<128x128xf32>, vector<64x128xf32> -> vector<64x128xf32>
    %c0_3 = arith.constant 0 : index
    %c0_4 = arith.constant 0 : index
    %3 = vector.load %arg3[%c0_3, %c0_4] : memref<1x128xf32, #tpu.memory_space<vmem>>, vector<1x128xf32>
    %4 = vector.broadcast %3 : vector<1x128xf32> to vector<64x128xf32>
    %5 = arith.addf %2, %4 : vector<64x128xf32>
    %c0_5 = arith.constant 0 : index
    %c0_6 = arith.constant 0 : index
    %6 = vector.load %arg10[%c0_5, %c0_6] : memref<64x128xf32, #tpu.memory_space<vmem>>, vector<64x128xf32>
    tpu.vector_store %arg10[%c0_5, %c0_6], %5 {strides = array<i32>} : memref<64x128xf32, #tpu.memory_space<vmem>>, vector<64x128xf32>,
    %cst_7 = arith.constant 0.000000e+00 : f32
    %7 = vector.broadcast %cst_7 : f32 to vector<8x128xf32>
    %cst_8 = arith.constant 0.000000e+00 : f32
    %8 = vector.broadcast %cst_8 : f32 to vector<8x128xf32>
    %c0_9 = arith.constant 0 : index
    %c0_10 = arith.constant 0 : index
    %9 = vector.load %arg10[%c0_9, %c0_10] : memref<64x128xf32, #tpu.memory_space<vmem>>, vector<8x128xf32>
    %c0_11 = arith.constant 0 : index
    %c0_12 = arith.constant 0 : index
    %10 = vector.load %arg2[%c0_11, %c0_12] : memref<128x128xf32, #tpu.memory_space<vmem>>, vector<128x128xf32>
    %cst_13 = arith.constant dense<0.000000e+00> : vector<8x128xf32>
    %11 = tpu.matmul %7, %10, %cst_13 {dimension_numbers = #tpu.dot_dimension_numbers<[1], [0], [0], [1], [0, 0, 1, 1], [], []>} : vector<8x128xf32>, vector<128x128xf32>, vector<8x128xf32> -> vector<8x128xf32>
    %12 = arith.addf %9, %11 : vector<8x128xf32>
    %13 = math.tanh %12 : vector<8x128xf32>
    %c1_i32 = arith.constant 1 : i32
    %c0_i32 = arith.constant 0 : i32
    %14 = arith.subi %c1_i32, %c0_i32 : i32
    %c8_i32 = arith.constant 8 : i32
    %15 = arith.muli %14, %c8_i32 : i32
    %16 = tpu.assume_multiple %15, 8 : i32
    %17 = arith.index_cast %16 : i32 to index
    %c0_14 = arith.constant 0 : index
    %18 = vector.load %arg10[%17, %c0_14] : memref<64x128xf32, #tpu.memory_space<vmem>>, vector<8x128xf32>
    %c0_15 = arith.constant 0 : index
    %c0_16 = arith.constant 0 : index
    %19 = vector.load %arg2[%c0_15, %c0_16] : memref<128x128xf32, #tpu.memory_space<vmem>>, vector<128x128xf32>
    %cst_17 = arith.constant dense<0.000000e+00> : vector<8x128xf32>
    %20 = tpu.matmul %13, %19, %cst_17 {dimension_numbers = #tpu.dot_dimension_numbers<[1], [0], [0], [1], [0, 0, 1, 1], [], []>} : vector<8x128xf32>, vector<128x128xf32>, vector<8x128xf32> -> vector<8x128xf32>
    %21 = arith.addf %18, %20 : vector<8x128xf32>
    %22 = math.tanh %21 : vector<8x128xf32>
    %c1_i32_18 = arith.constant 1 : i32
    %23 = arith.subi %c1_i32, %c1_i32_18 : i32
    %c0_19 = arith.constant 0 : index
    %c0_20 = arith.constant 0 : index
    %24 = vector.load %arg4[%c0_19, %c0_20] : memref<128x128xf32, #tpu.memory_space<vmem>>, vector<128x128xf32>
    %cst_21 = arith.constant dense<0.000000e+00> : vector<8x128xf32>
    %25 = tpu.matmul %13, %24, %cst_21 {dimension_numbers = #tpu.dot_dimension_numbers<[1], [0], [0], [1], [0, 0, 1, 1], [], []>} : vector<8x128xf32>, vector<128x128xf32>, vector<8x128xf32> -> vector<8x128xf32>
    %c0_22 = arith.constant 0 : index
    %c0_23 = arith.constant 0 : index
    %26 = vector.load %arg6[%c0_22, %c0_23] : memref<1x128xf32, #tpu.memory_space<vmem>>, vector<1x128xf32>
    %27 = vector.broadcast %26 : vector<1x128xf32> to vector<8x128xf32>
    %28 = arith.addf %25, %27 : vector<8x128xf32>
    %c0_24 = arith.constant 0 : index
    %c0_25 = arith.constant 0 : index
    %29 = vector.load %arg5[%c0_24, %c0_25] : memref<128x128xf32, #tpu.memory_space<vmem>>, vector<128x128xf32>
    %cst_26 = arith.constant dense<0.000000e+00> : vector<8x128xf32>
    %30 = tpu.matmul %8, %29, %cst_26 {dimension_numbers = #tpu.dot_dimension_numbers<[1], [0], [0], [1], [0, 0, 1, 1], [], []>} : vector<8x128xf32>, vector<128x128xf32>, vector<8x128xf32> -> vector<8x128xf32>
    %31 = arith.addf %28, %30 : vector<8x128xf32>
    %32 = math.tanh %31 : vector<8x128xf32>
    %c8_i32_27 = arith.constant 8 : i32
    %33 = arith.muli %23, %c8_i32_27 : i32
    %34 = tpu.assume_multiple %33, 8 : i32
    %35 = arith.index_cast %34 : i32 to index
    %c0_28 = arith.constant 0 : index
    %36 = vector.load %arg10[%35, %c0_28] : memref<64x128xf32, #tpu.memory_space<vmem>>, vector<8x128xf32>
    tpu.vector_store %arg10[%35, %c0_28], %32 {strides = array<i32>} : memref<64x128xf32, #tpu.memory_space<vmem>>, vector<8x128xf32>,
    %c2_i32 = arith.constant 2 : i32
    %c0_i32_29 = arith.constant 0 : i32
    %37 = arith.subi %c2_i32, %c0_i32_29 : i32
    %c8_i32_30 = arith.constant 8 : i32
    %38 = arith.muli %37, %c8_i32_30 : i32
    %39 = tpu.assume_multiple %38, 8 : i32
    %40 = arith.index_cast %39 : i32 to index
    %c0_31 = arith.constant 0 : index
    %41 = vector.load %arg10[%40, %c0_31] : memref<64x128xf32, #tpu.memory_space<vmem>>, vector<8x128xf32>
    %c0_32 = arith.constant 0 : index
    %c0_33 = arith.constant 0 : index
    %42 = vector.load %arg2[%c0_32, %c0_33] : memref<128x128xf32, #tpu.memory_space<vmem>>, vector<128x128xf32>
    %cst_34 = arith.constant dense<0.000000e+00> : vector<8x128xf32>
    %43 = tpu.matmul %22, %42, %cst_34 {dimension_numbers = #tpu.dot_dimension_numbers<[1], [0], [0], [1], [0, 0, 1, 1], [], []>} : vector<8x128xf32>, vector<128x128xf32>, vector<8x128xf32> -> vector<8x128xf32>
    %44 = arith.addf %41, %43 : vector<8x128xf32>
    %45 = math.tanh %44 : vector<8x128xf32>
    %c1_i32_35 = arith.constant 1 : i32
    %46 = arith.subi %c2_i32, %c1_i32_35 : i32
    %c0_36 = arith.constant 0 : index
    %c0_37 = arith.constant 0 : index
    %47 = vector.load %arg4[%c0_36, %c0_37] : memref<128x128xf32, #tpu.memory_space<vmem>>, vector<128x128xf32>
    %cst_38 = arith.constant dense<0.000000e+00> : vector<8x128xf32>
    %48 = tpu.matmul %22, %47, %cst_38 {dimension_numbers = #tpu.dot_dimension_numbers<[1], [0], [0], [1], [0, 0, 1, 1], [], []>} : vector<8x128xf32>, vector<128x128xf32>, vector<8x128xf32> -> vector<8x128xf32>
    %c0_39 = arith.constant 0 : index
    %c0_40 = arith.constant 0 : index
    %49 = vector.load %arg6[%c0_39, %c0_40] : memref<1x128xf32, #tpu.memory_space<vmem>>, vector<1x128xf32>
    %50 = vector.broadcast %49 : vector<1x128xf32> to vector<8x128xf32>
    %51 = arith.addf %48, %50 : vector<8x128xf32>
    %c0_41 = arith.constant 0 : index
    %c0_42 = arith.constant 0 : index
    %52 = vector.load %arg5[%c0_41, %c0_42] : memref<128x128xf32, #tpu.memory_space<vmem>>, vector<128x128xf32>
    %cst_43 = arith.constant dense<0.000000e+00> : vector<8x128xf32>
    %53 = tpu.matmul %32, %52, %cst_43 {dimension_numbers = #tpu.dot_dimension_numbers<[1], [0], [0], [1], [0, 0, 1, 1], [], []>} : vector<8x128xf32>, vector<128x128xf32>, vector<8x128xf32> -> vector<8x128xf32>
    %54 = arith.addf %51, %53 : vector<8x128xf32>
    %55 = math.tanh %54 : vector<8x128xf32>
    %c8_i32_44 = arith.constant 8 : i32
    %56 = arith.muli %46, %c8_i32_44 : i32
    %57 = tpu.assume_multiple %56, 8 : i32
    %58 = arith.index_cast %57 : i32 to index
    %c0_45 = arith.constant 0 : index
    %59 = vector.load %arg10[%58, %c0_45] : memref<64x128xf32, #tpu.memory_space<vmem>>, vector<8x128xf32>
    tpu.vector_store %arg10[%58, %c0_45], %55 {strides = array<i32>} : memref<64x128xf32, #tpu.memory_space<vmem>>, vector<8x128xf32>,
    %c3_i32 = arith.constant 3 : i32
    %c0_i32_46 = arith.constant 0 : i32
    %60 = arith.subi %c3_i32, %c0_i32_46 : i32
    %c8_i32_47 = arith.constant 8 : i32
    %61 = arith.muli %60, %c8_i32_47 : i32
    %62 = tpu.assume_multiple %61, 8 : i32
    %63 = arith.index_cast %62 : i32 to index
    %c0_48 = arith.constant 0 : index
    %64 = vector.load %arg10[%63, %c0_48] : memref<64x128xf32, #tpu.memory_space<vmem>>, vector<8x128xf32>
    %c0_49 = arith.constant 0 : index
    %c0_50 = arith.constant 0 : index
    %65 = vector.load %arg2[%c0_49, %c0_50] : memref<128x128xf32, #tpu.memory_space<vmem>>, vector<128x128xf32>
    %cst_51 = arith.constant dense<0.000000e+00> : vector<8x128xf32>
    %66 = tpu.matmul %45, %65, %cst_51 {dimension_numbers = #tpu.dot_dimension_numbers<[1], [0], [0], [1], [0, 0, 1, 1], [], []>} : vector<8x128xf32>, vector<128x128xf32>, vector<8x128xf32> -> vector<8x128xf32>
    %67 = arith.addf %64, %66 : vector<8x128xf32>
    %68 = math.tanh %67 : vector<8x128xf32>
    %c1_i32_52 = arith.constant 1 : i32
    %69 = arith.subi %c3_i32, %c1_i32_52 : i32
    %c0_53 = arith.constant 0 : index
    %c0_54 = arith.constant 0 : index
    %70 = vector.load %arg4[%c0_53, %c0_54] : memref<128x128xf32, #tpu.memory_space<vmem>>, vector<128x128xf32>
    %cst_55 = arith.constant dense<0.000000e+00> : vector<8x128xf32>
    %71 = tpu.matmul %45, %70, %cst_55 {dimension_numbers = #tpu.dot_dimension_numbers<[1], [0], [0], [1], [0, 0, 1, 1], [], []>} : vector<8x128xf32>, vector<128x128xf32>, vector<8x128xf32> -> vector<8x128xf32>
    %c0_56 = arith.constant 0 : index
    %c0_57 = arith.constant 0 : index
    %72 = vector.load %arg6[%c0_56, %c0_57] : memref<1x128xf32, #tpu.memory_space<vmem>>, vector<1x128xf32>
    %73 = vector.broadcast %72 : vector<1x128xf32> to vector<8x128xf32>
    %74 = arith.addf %71, %73 : vector<8x128xf32>
    %c0_58 = arith.constant 0 : index
    %c0_59 = arith.constant 0 : index
    %75 = vector.load %arg5[%c0_58, %c0_59] : memref<128x128xf32, #tpu.memory_space<vmem>>, vector<128x128xf32>
    %cst_60 = arith.constant dense<0.000000e+00> : vector<8x128xf32>
    %76 = tpu.matmul %55, %75, %cst_60 {dimension_numbers = #tpu.dot_dimension_numbers<[1], [0], [0], [1], [0, 0, 1, 1], [], []>} : vector<8x128xf32>, vector<128x128xf32>, vector<8x128xf32> -> vector<8x128xf32>
    %77 = arith.addf %74, %76 : vector<8x128xf32>
    %78 = math.tanh %77 : vector<8x128xf32>
    %c8_i32_61 = arith.constant 8 : i32
    %79 = arith.muli %69, %c8_i32_61 : i32
    %80 = tpu.assume_multiple %79, 8 : i32
    %81 = arith.index_cast %80 : i32 to index
    %c0_62 = arith.constant 0 : index
    %82 = vector.load %arg10[%81, %c0_62] : memref<64x128xf32, #tpu.memory_space<vmem>>, vector<8x128xf32>
    tpu.vector_store %arg10[%81, %c0_62], %78 {strides = array<i32>} : memref<64x128xf32, #tpu.memory_space<vmem>>, vector<8x128xf32>,
    %c4_i32 = arith.constant 4 : i32
    %c0_i32_63 = arith.constant 0 : i32
    %83 = arith.subi %c4_i32, %c0_i32_63 : i32
    %c8_i32_64 = arith.constant 8 : i32
    %84 = arith.muli %83, %c8_i32_64 : i32
    %85 = tpu.assume_multiple %84, 8 : i32
    %86 = arith.index_cast %85 : i32 to index
    %c0_65 = arith.constant 0 : index
    %87 = vector.load %arg10[%86, %c0_65] : memref<64x128xf32, #tpu.memory_space<vmem>>, vector<8x128xf32>
    %c0_66 = arith.constant 0 : index
    %c0_67 = arith.constant 0 : index
    %88 = vector.load %arg2[%c0_66, %c0_67] : memref<128x128xf32, #tpu.memory_space<vmem>>, vector<128x128xf32>
    %cst_68 = arith.constant dense<0.000000e+00> : vector<8x128xf32>
    %89 = tpu.matmul %68, %88, %cst_68 {dimension_numbers = #tpu.dot_dimension_numbers<[1], [0], [0], [1], [0, 0, 1, 1], [], []>} : vector<8x128xf32>, vector<128x128xf32>, vector<8x128xf32> -> vector<8x128xf32>
    %90 = arith.addf %87, %89 : vector<8x128xf32>
    %91 = math.tanh %90 : vector<8x128xf32>
    %c1_i32_69 = arith.constant 1 : i32
    %92 = arith.subi %c4_i32, %c1_i32_69 : i32
    %c0_70 = arith.constant 0 : index
    %c0_71 = arith.constant 0 : index
    %93 = vector.load %arg4[%c0_70, %c0_71] : memref<128x128xf32, #tpu.memory_space<vmem>>, vector<128x128xf32>
    %cst_72 = arith.constant dense<0.000000e+00> : vector<8x128xf32>
    %94 = tpu.matmul %68, %93, %cst_72 {dimension_numbers = #tpu.dot_dimension_numbers<[1], [0], [0], [1], [0, 0, 1, 1], [], []>} : vector<8x128xf32>, vector<128x128xf32>, vector<8x128xf32> -> vector<8x128xf32>
    %c0_73 = arith.constant 0 : index
    %c0_74 = arith.constant 0 : index
    %95 = vector.load %arg6[%c0_73, %c0_74] : memref<1x128xf32, #tpu.memory_space<vmem>>, vector<1x128xf32>
    %96 = vector.broadcast %95 : vector<1x128xf32> to vector<8x128xf32>
    %97 = arith.addf %94, %96 : vector<8x128xf32>
    %c0_75 = arith.constant 0 : index
    %c0_76 = arith.constant 0 : index
    %98 = vector.load %arg5[%c0_75, %c0_76] : memref<128x128xf32, #tpu.memory_space<vmem>>, vector<128x128xf32>
    %cst_77 = arith.constant dense<0.000000e+00> : vector<8x128xf32>
    %99 = tpu.matmul %78, %98, %cst_77 {dimension_numbers = #tpu.dot_dimension_numbers<[1], [0], [0], [1], [0, 0, 1, 1], [], []>} : vector<8x128xf32>, vector<128x128xf32>, vector<8x128xf32> -> vector<8x128xf32>
    %100 = arith.addf %97, %99 : vector<8x128xf32>
    %101 = math.tanh %100 : vector<8x128xf32>
    %c8_i32_78 = arith.constant 8 : i32
    %102 = arith.muli %92, %c8_i32_78 : i32
    %103 = tpu.assume_multiple %102, 8 : i32
    %104 = arith.index_cast %103 : i32 to index
    %c0_79 = arith.constant 0 : index
    %105 = vector.load %arg10[%104, %c0_79] : memref<64x128xf32, #tpu.memory_space<vmem>>, vector<8x128xf32>
    tpu.vector_store %arg10[%104, %c0_79], %101 {strides = array<i32>} : memref<64x128xf32, #tpu.memory_space<vmem>>, vector<8x128xf32>,
    %c5_i32 = arith.constant 5 : i32
    %c0_i32_80 = arith.constant 0 : i32
    %106 = arith.subi %c5_i32, %c0_i32_80 : i32
    %c8_i32_81 = arith.constant 8 : i32
    %107 = arith.muli %106, %c8_i32_81 : i32
    %108 = tpu.assume_multiple %107, 8 : i32
    %109 = arith.index_cast %108 : i32 to index
    %c0_82 = arith.constant 0 : index
    %110 = vector.load %arg10[%109, %c0_82] : memref<64x128xf32, #tpu.memory_space<vmem>>, vector<8x128xf32>
    %c0_83 = arith.constant 0 : index
    %c0_84 = arith.constant 0 : index
    %111 = vector.load %arg2[%c0_83, %c0_84] : memref<128x128xf32, #tpu.memory_space<vmem>>, vector<128x128xf32>
    %cst_85 = arith.constant dense<0.000000e+00> : vector<8x128xf32>
    %112 = tpu.matmul %91, %111, %cst_85 {dimension_numbers = #tpu.dot_dimension_numbers<[1], [0], [0], [1], [0, 0, 1, 1], [], []>} : vector<8x128xf32>, vector<128x128xf32>, vector<8x128xf32> -> vector<8x128xf32>
    %113 = arith.addf %110, %112 : vector<8x128xf32>
    %114 = math.tanh %113 : vector<8x128xf32>
    %c1_i32_86 = arith.constant 1 : i32
    %115 = arith.subi %c5_i32, %c1_i32_86 : i32
    %c0_87 = arith.constant 0 : index
    %c0_88 = arith.constant 0 : index
    %116 = vector.load %arg4[%c0_87, %c0_88] : memref<128x128xf32, #tpu.memory_space<vmem>>, vector<128x128xf32>
    %cst_89 = arith.constant dense<0.000000e+00> : vector<8x128xf32>
    %117 = tpu.matmul %91, %116, %cst_89 {dimension_numbers = #tpu.dot_dimension_numbers<[1], [0], [0], [1], [0, 0, 1, 1], [], []>} : vector<8x128xf32>, vector<128x128xf32>, vector<8x128xf32> -> vector<8x128xf32>
    %c0_90 = arith.constant 0 : index
    %c0_91 = arith.constant 0 : index
    %118 = vector.load %arg6[%c0_90, %c0_91] : memref<1x128xf32, #tpu.memory_space<vmem>>, vector<1x128xf32>
    %119 = vector.broadcast %118 : vector<1x128xf32> to vector<8x128xf32>
    %120 = arith.addf %117, %119 : vector<8x128xf32>
    %c0_92 = arith.constant 0 : index
    %c0_93 = arith.constant 0 : index
    %121 = vector.load %arg5[%c0_92, %c0_93] : memref<128x128xf32, #tpu.memory_space<vmem>>, vector<128x128xf32>
    %cst_94 = arith.constant dense<0.000000e+00> : vector<8x128xf32>
    %122 = tpu.matmul %101, %121, %cst_94 {dimension_numbers = #tpu.dot_dimension_numbers<[1], [0], [0], [1], [0, 0, 1, 1], [], []>} : vector<8x128xf32>, vector<128x128xf32>, vector<8x128xf32> -> vector<8x128xf32>
    %123 = arith.addf %120, %122 : vector<8x128xf32>
    %124 = math.tanh %123 : vector<8x128xf32>
    %c8_i32_95 = arith.constant 8 : i32
    %125 = arith.muli %115, %c8_i32_95 : i32
    %126 = tpu.assume_multiple %125, 8 : i32
    %127 = arith.index_cast %126 : i32 to index
    %c0_96 = arith.constant 0 : index
    %128 = vector.load %arg10[%127, %c0_96] : memref<64x128xf32, #tpu.memory_space<vmem>>, vector<8x128xf32>
    tpu.vector_store %arg10[%127, %c0_96], %124 {strides = array<i32>} : memref<64x128xf32, #tpu.memory_space<vmem>>, vector<8x128xf32>,
    %c6_i32 = arith.constant 6 : i32
    %c0_i32_97 = arith.constant 0 : i32
    %129 = arith.subi %c6_i32, %c0_i32_97 : i32
    %c8_i32_98 = arith.constant 8 : i32
    %130 = arith.muli %129, %c8_i32_98 : i32
    %131 = tpu.assume_multiple %130, 8 : i32
    %132 = arith.index_cast %131 : i32 to index
    %c0_99 = arith.constant 0 : index
    %133 = vector.load %arg10[%132, %c0_99] : memref<64x128xf32, #tpu.memory_space<vmem>>, vector<8x128xf32>
    %c0_100 = arith.constant 0 : index
    %c0_101 = arith.constant 0 : index
    %134 = vector.load %arg2[%c0_100, %c0_101] : memref<128x128xf32, #tpu.memory_space<vmem>>, vector<128x128xf32>
    %cst_102 = arith.constant dense<0.000000e+00> : vector<8x128xf32>
    %135 = tpu.matmul %114, %134, %cst_102 {dimension_numbers = #tpu.dot_dimension_numbers<[1], [0], [0], [1], [0, 0, 1, 1], [], []>} : vector<8x128xf32>, vector<128x128xf32>, vector<8x128xf32> -> vector<8x128xf32>
    %136 = arith.addf %133, %135 : vector<8x128xf32>
    %137 = math.tanh %136 : vector<8x128xf32>
    %c1_i32_103 = arith.constant 1 : i32
    %138 = arith.subi %c6_i32, %c1_i32_103 : i32
    %c0_104 = arith.constant 0 : index
    %c0_105 = arith.constant 0 : index
    %139 = vector.load %arg4[%c0_104, %c0_105] : memref<128x128xf32, #tpu.memory_space<vmem>>, vector<128x128xf32>
    %cst_106 = arith.constant dense<0.000000e+00> : vector<8x128xf32>
    %140 = tpu.matmul %114, %139, %cst_106 {dimension_numbers = #tpu.dot_dimension_numbers<[1], [0], [0], [1], [0, 0, 1, 1], [], []>} : vector<8x128xf32>, vector<128x128xf32>, vector<8x128xf32> -> vector<8x128xf32>
    %c0_107 = arith.constant 0 : index
    %c0_108 = arith.constant 0 : index
    %141 = vector.load %arg6[%c0_107, %c0_108] : memref<1x128xf32, #tpu.memory_space<vmem>>, vector<1x128xf32>
    %142 = vector.broadcast %141 : vector<1x128xf32> to vector<8x128xf32>
    %143 = arith.addf %140, %142 : vector<8x128xf32>
    %c0_109 = arith.constant 0 : index
    %c0_110 = arith.constant 0 : index
    %144 = vector.load %arg5[%c0_109, %c0_110] : memref<128x128xf32, #tpu.memory_space<vmem>>, vector<128x128xf32>
    %cst_111 = arith.constant dense<0.000000e+00> : vector<8x128xf32>
    %145 = tpu.matmul %124, %144, %cst_111 {dimension_numbers = #tpu.dot_dimension_numbers<[1], [0], [0], [1], [0, 0, 1, 1], [], []>} : vector<8x128xf32>, vector<128x128xf32>, vector<8x128xf32> -> vector<8x128xf32>
    %146 = arith.addf %143, %145 : vector<8x128xf32>
    %147 = math.tanh %146 : vector<8x128xf32>
    %c8_i32_112 = arith.constant 8 : i32
    %148 = arith.muli %138, %c8_i32_112 : i32
    %149 = tpu.assume_multiple %148, 8 : i32
    %150 = arith.index_cast %149 : i32 to index
    %c0_113 = arith.constant 0 : index
    %151 = vector.load %arg10[%150, %c0_113] : memref<64x128xf32, #tpu.memory_space<vmem>>, vector<8x128xf32>
    tpu.vector_store %arg10[%150, %c0_113], %147 {strides = array<i32>} : memref<64x128xf32, #tpu.memory_space<vmem>>, vector<8x128xf32>,
    %c7_i32 = arith.constant 7 : i32
    %c0_i32_114 = arith.constant 0 : i32
    %152 = arith.subi %c7_i32, %c0_i32_114 : i32
    %c8_i32_115 = arith.constant 8 : i32
    %153 = arith.muli %152, %c8_i32_115 : i32
    %154 = tpu.assume_multiple %153, 8 : i32
    %155 = arith.index_cast %154 : i32 to index
    %c0_116 = arith.constant 0 : index
    %156 = vector.load %arg10[%155, %c0_116] : memref<64x128xf32, #tpu.memory_space<vmem>>, vector<8x128xf32>
    %c0_117 = arith.constant 0 : index
    %c0_118 = arith.constant 0 : index
    %157 = vector.load %arg2[%c0_117, %c0_118] : memref<128x128xf32, #tpu.memory_space<vmem>>, vector<128x128xf32>
    %cst_119 = arith.constant dense<0.000000e+00> : vector<8x128xf32>
    %158 = tpu.matmul %137, %157, %cst_119 {dimension_numbers = #tpu.dot_dimension_numbers<[1], [0], [0], [1], [0, 0, 1, 1], [], []>} : vector<8x128xf32>, vector<128x128xf32>, vector<8x128xf32> -> vector<8x128xf32>
    %159 = arith.addf %156, %158 : vector<8x128xf32>
    %160 = math.tanh %159 : vector<8x128xf32>
    %c1_i32_120 = arith.constant 1 : i32
    %161 = arith.subi %c7_i32, %c1_i32_120 : i32
    %c0_121 = arith.constant 0 : index
    %c0_122 = arith.constant 0 : index
    %162 = vector.load %arg4[%c0_121, %c0_122] : memref<128x128xf32, #tpu.memory_space<vmem>>, vector<128x128xf32>
    %cst_123 = arith.constant dense<0.000000e+00> : vector<8x128xf32>
    %163 = tpu.matmul %137, %162, %cst_123 {dimension_numbers = #tpu.dot_dimension_numbers<[1], [0], [0], [1], [0, 0, 1, 1], [], []>} : vector<8x128xf32>, vector<128x128xf32>, vector<8x128xf32> -> vector<8x128xf32>
    %c0_124 = arith.constant 0 : index
    %c0_125 = arith.constant 0 : index
    %164 = vector.load %arg6[%c0_124, %c0_125] : memref<1x128xf32, #tpu.memory_space<vmem>>, vector<1x128xf32>
    %165 = vector.broadcast %164 : vector<1x128xf32> to vector<8x128xf32>
    %166 = arith.addf %163, %165 : vector<8x128xf32>
    %c0_126 = arith.constant 0 : index
    %c0_127 = arith.constant 0 : index
    %167 = vector.load %arg5[%c0_126, %c0_127] : memref<128x128xf32, #tpu.memory_space<vmem>>, vector<128x128xf32>
    %cst_128 = arith.constant dense<0.000000e+00> : vector<8x128xf32>
    %168 = tpu.matmul %147, %167, %cst_128 {dimension_numbers = #tpu.dot_dimension_numbers<[1], [0], [0], [1], [0, 0, 1, 1], [], []>} : vector<8x128xf32>, vector<128x128xf32>, vector<8x128xf32> -> vector<8x128xf32>
    %169 = arith.addf %166, %168 : vector<8x128xf32>
    %170 = math.tanh %169 : vector<8x128xf32>
    %c8_i32_129 = arith.constant 8 : i32
    %171 = arith.muli %161, %c8_i32_129 : i32
    %172 = tpu.assume_multiple %171, 8 : i32
    %173 = arith.index_cast %172 : i32 to index
    %c0_130 = arith.constant 0 : index
    %174 = vector.load %arg10[%173, %c0_130] : memref<64x128xf32, #tpu.memory_space<vmem>>, vector<8x128xf32>
    tpu.vector_store %arg10[%173, %c0_130], %170 {strides = array<i32>} : memref<64x128xf32, #tpu.memory_space<vmem>>, vector<8x128xf32>,
    %c7_i32_131 = arith.constant 7 : i32
    %c0_132 = arith.constant 0 : index
    %c0_133 = arith.constant 0 : index
    %175 = vector.load %arg4[%c0_132, %c0_133] : memref<128x128xf32, #tpu.memory_space<vmem>>, vector<128x128xf32>
    %cst_134 = arith.constant dense<0.000000e+00> : vector<8x128xf32>
    %176 = tpu.matmul %160, %175, %cst_134 {dimension_numbers = #tpu.dot_dimension_numbers<[1], [0], [0], [1], [0, 0, 1, 1], [], []>} : vector<8x128xf32>, vector<128x128xf32>, vector<8x128xf32> -> vector<8x128xf32>
    %c0_135 = arith.constant 0 : index
    %c0_136 = arith.constant 0 : index
    %177 = vector.load %arg6[%c0_135, %c0_136] : memref<1x128xf32, #tpu.memory_space<vmem>>, vector<1x128xf32>
    %178 = vector.broadcast %177 : vector<1x128xf32> to vector<8x128xf32>
    %179 = arith.addf %176, %178 : vector<8x128xf32>
    %c0_137 = arith.constant 0 : index
    %c0_138 = arith.constant 0 : index
    %180 = vector.load %arg5[%c0_137, %c0_138] : memref<128x128xf32, #tpu.memory_space<vmem>>, vector<128x128xf32>
    %cst_139 = arith.constant dense<0.000000e+00> : vector<8x128xf32>
    %181 = tpu.matmul %170, %180, %cst_139 {dimension_numbers = #tpu.dot_dimension_numbers<[1], [0], [0], [1], [0, 0, 1, 1], [], []>} : vector<8x128xf32>, vector<128x128xf32>, vector<8x128xf32> -> vector<8x128xf32>
    %182 = arith.addf %179, %181 : vector<8x128xf32>
    %183 = math.tanh %182 : vector<8x128xf32>
    %c56 = arith.constant 56 : index
    %c0_140 = arith.constant 0 : index
    %184 = vector.load %arg10[%c56, %c0_140] : memref<64x128xf32, #tpu.memory_space<vmem>>, vector<8x128xf32>
    tpu.vector_store %arg10[%c56, %c0_140], %183 {strides = array<i32>} : memref<64x128xf32, #tpu.memory_space<vmem>>, vector<8x128xf32>,
    %c0_141 = arith.constant 0 : index
    %c0_142 = arith.constant 0 : index
    %185 = vector.load %arg10[%c0_141, %c0_142] : memref<64x128xf32, #tpu.memory_space<vmem>>, vector<64x128xf32>
    %c0_143 = arith.constant 0 : index
    %c0_144 = arith.constant 0 : index
    %186 = vector.load %arg7[%c0_143, %c0_144] : memref<128x128xf32, #tpu.memory_space<vmem>>, vector<128x128xf32>
    %cst_145 = arith.constant dense<0.000000e+00> : vector<64x128xf32>
    %187 = tpu.matmul %185, %186, %cst_145 {dimension_numbers = #tpu.dot_dimension_numbers<[1], [0], [0], [1], [0, 0, 1, 1], [], []>} : vector<64x128xf32>, vector<128x128xf32>, vector<64x128xf32> -> vector<64x128xf32>
    %c0_146 = arith.constant 0 : index
    %c0_147 = arith.constant 0 : index
    %188 = vector.load %arg8[%c0_146, %c0_147] : memref<1x128xf32, #tpu.memory_space<vmem>>, vector<1x128xf32>
    %189 = vector.broadcast %188 : vector<1x128xf32> to vector<64x128xf32>
    %190 = arith.addf %187, %189 : vector<64x128xf32>
    %c0_148 = arith.constant 0 : index
    %c0_149 = arith.constant 0 : index
    %191 = vector.load %arg9[%c0_148, %c0_149] : memref<64x128xf32, #tpu.memory_space<vmem>>, vector<64x128xf32>
    tpu.vector_store %arg9[%c0_148, %c0_149], %190 {strides = array<i32>} : memref<64x128xf32, #tpu.memory_space<vmem>>, vector<64x128xf32>,
    return
  }
}

</mosaic_0001>

<bundles_post_ra>
// kernel: rnn_model_forward.1
= control target key start
LH: loop header
LB: loop body
LE: loop exit
PB: predicated region body
PF: predicated region fallthrough
CT: control target
= control target key end

     0   :  { %v4577_v2 = vmov 0.0|0.0   ;;  %vm4578_vm0 = vmmov 0   ;;  %v4579_v4 = vmov 0.0   ;;  %s5669_s1 = inlined_call_operand.vmem [shape: f32[128,128], index: 1, kind: input, shape index: {}]   ;;  %s5670_s2 = inlined_call_operand.vmem [shape: f32[128,128], index: 2, kind: input, shape index: {}]   ;;  %s5671_s0 = inlined_call_operand.vmem [shape: f32[64,128], index: 0, kind: input, shape index: {}]   ;;  %s5672_s4 = inlined_call_operand.vmem [shape: f32[128,128], index: 4, kind: input, shape index: {}]   ;;  %s5673_s3 = inlined_call_operand.vmem [shape: f32[1,128], index: 3, kind: input, shape index: {}]   ;;  %s5674_s5 = inlined_call_operand.vmem [shape: f32[128,128], index: 5, kind: input, shape index: {}]   ;;  %s5675_s6 = inlined_call_operand.vmem [shape: f32[1,128], index: 6, kind: input, shape index: {}]   ;;  %s5676_s7 = inlined_call_operand.vmem [shape: f32[128,128], index: 7, kind: input, shape index: {}]   ;;  %s5677_s8 = inlined_call_operand.vmem [shape: f32[1,128], index: 8, kind: input, shape index: {}]   ;;  %s5678_s9 = inlined_call_operand.vmem [shape: f32[64,128], index: 9, kind: output, shape index: {}]  }
   0x1   :  { %v40_v0 = vld [vmem:[%s5669_s1] sm:$0xff]  ;;  %v41_v1 = vld [vmem:[%s5669_s1 + $0x8] sm:$0xff]  ;;  %3909 = vmatprep.subr.bf16.mxu1 %v4577_v2  ;;  %3025 = vmatprep.mubr.msk.f32.mxu1 %vm4578_vm0, %v4579_v4  ;;  %v42_v7 = vld [vmem:[%s5669_s1 + $0x10] sm:$0xff] }
   0x2   :  { %v177_v3 = vld [vmem:[%s5670_s2] sm:$0xff]  ;;  %v3877_v5 = vpack.c.bf16 %v41_v1, %v40_v0  ;;  %v178_v6 = vld [vmem:[%s5670_s2 + $0x8] sm:$0xff]  ;;  %v43_v8 = vld [vmem:[%s5669_s1 + $0x18] sm:$0xff] }
   0x3   :  { %v4651_v9 = vpack.c.bf16 %v178_v6, %v177_v3  ;;  %v3881_v10 = vpack.c.bf16 %v43_v8, %v42_v7  ;;  %v179_v11 = vld [vmem:[%s5670_s2 + $0x10] sm:$0xff]  ;;  %v180_v12 = vld [vmem:[%s5670_s2 + $0x18] sm:$0xff]  ;;  %v44_v13 = vld [vmem:[%s5669_s1 + $0x20] sm:$0xff] }
   0x4   :  { %3878 = vmatprep.subr.bf16.mxu0 %v3877_v5  ;;  %v45_v14 = vld [vmem:[%s5669_s1 + $0x28] sm:$0xff]  ;;  %v4666_v15 = vpack.c.bf16 %v180_v12, %v179_v11  ;;  %v181_v17 = vld [vmem:[%s5670_s2 + $0x20] sm:$0xff]  ;;  %v46_v19 = vld [vmem:[%s5669_s1 + $0x30] sm:$0xff] }
   0x5   :  { %3880 = vmatpush3.bf16.msra.mxu0 %v3877_v5  ;;  %3911 = vmatpush3.bf16.msra.mxu1 %v4651_v9  ;;  %v3885_v16 = vpack.c.bf16 %v45_v14, %v44_v13  ;;  %v182_v18 = vld [vmem:[%s5670_s2 + $0x28] sm:$0xff]  ;;  %v47_v20 = vld [vmem:[%s5669_s1 + $0x38] sm:$0xff]  ;;  %v183_v23 = vld [vmem:[%s5670_s2 + $0x30] sm:$0xff] }
   0x6   :  { %3882 = vmatprep.subr.bf16.mxu0 %v3881_v10  ;;  %3912 = vmatprep.subr.bf16.mxu1 %v4577_v2  ;;  %v4682_v21 = vpack.c.bf16 %v182_v18, %v181_v17  ;;  %v3889_v22 = vpack.c.bf16 %v47_v20, %v46_v19  ;;  %v184_v24 = vld [vmem:[%s5670_s2 + $0x38] sm:$0xff]  ;;  %v48_v25 = vld [vmem:[%s5669_s1 + $0x40] sm:$0xff]  ;;  %v49_v26 = vld [vmem:[%s5669_s1 + $0x48] sm:$0xff] }
   0x7   :  { %v32_v27 = vld [vmem:[%s5671_s0] sm:$0xff]  ;;  %v4701_v28 = vpack.c.bf16 %v184_v24, %v183_v23  ;;  %v3893_v29 = vpack.c.bf16 %v49_v26, %v48_v25  ;;  %v186_v31 = vld [vmem:[%s5670_s2 + $0x48] sm:$0xff]  ;;  %v50_v32 = vld [vmem:[%s5669_s1 + $0x50] sm:$0xff] }
   0x8   :  { %2981 = vmatprep.mubr.f32.mxu0 %v32_v27  ;;  %v185_v30 = vld [vmem:[%s5670_s2 + $0x40] sm:$0xff]  ;;  %v51_v33 = vld [vmem:[%s5669_s1 + $0x58] sm:$0xff]  ;;  %v187_v36 = vld [vmem:[%s5670_s2 + $0x50] sm:$0xff] }
   0x9   :  { %3884 = vmatpush3.bf16.msra.mxu0 %v3881_v10  ;;  %3914 = vmatpush3.bf16.msra.mxu1 %v4666_v15  ;;  %v4717_v34 = vpack.c.bf16 %v186_v31, %v185_v30  ;;  %v3897_v35 = vpack.c.bf16 %v51_v33, %v50_v32  ;;  %v188_v37 = vld [vmem:[%s5670_s2 + $0x58] sm:$0xff]  ;;  %v52_v38 = vld [vmem:[%s5669_s1 + $0x60] sm:$0xff]  ;;  %v53_v39 = vld [vmem:[%s5669_s1 + $0x68] sm:$0xff] }
   0xa   :  { %3886 = vmatprep.subr.bf16.mxu0 %v3885_v16  ;;  %3915 = vmatprep.subr.bf16.mxu1 %v4577_v2  ;;  %v4733_v40 = vpack.c.bf16 %v188_v37, %v187_v36  ;;  %v3901_v41 = vpack.c.bf16 %v53_v39, %v52_v38  ;;  %v189_v42 = vld [vmem:[%s5670_s2 + $0x60] sm:$0xff]  ;;  %v190_v43 = vld [vmem:[%s5670_s2 + $0x68] sm:$0xff]  ;;  %v54_v44 = vld [vmem:[%s5669_s1 + $0x70] sm:$0xff] }
   0xb   :  { %v55_v45 = vld [vmem:[%s5669_s1 + $0x78] sm:$0xff]  ;;  %v4749_v46 = vpack.c.bf16 %v190_v43, %v189_v42  ;;  %v191_v48 = vld [vmem:[%s5670_s2 + $0x70] sm:$0xff]  ;;  %v339_v51 = vld [vmem:[%s5672_s4] sm:$0xff] }
   0xc   :  { %v3905_v47 = vpack.c.bf16 %v55_v45, %v54_v44  ;;  %v192_v49 = vld [vmem:[%s5670_s2 + $0x78] sm:$0xff]  ;;  %v340_v52 = vld [vmem:[%s5672_s4 + $0x8] sm:$0xff]  ;;  %v341_v55 = vld [vmem:[%s5672_s4 + $0x10] sm:$0xff] }
   0xd   :  { %3888 = vmatpush3.bf16.msra.mxu0 %v3885_v16  ;;  %3917 = vmatpush3.bf16.msra.mxu1 %v4682_v21  ;;  %v4759_v50 = vpack.c.bf16 %v192_v49, %v191_v48  ;;  %v33_v53 = vld [vmem:[%s5671_s0 + $0x8] sm:$0xff]  ;;  %v4772_v54 = vpack.c.bf16 %v340_v52, %v339_v51  ;;  %v342_v56 = vld [vmem:[%s5672_s4 + $0x18] sm:$0xff]  ;;  %v343_v58 = vld [vmem:[%s5672_s4 + $0x20] sm:$0xff] }
   0xe   :  { %3890 = vmatprep.subr.bf16.mxu0 %v3889_v22  ;;  %3918 = vmatprep.subr.bf16.mxu1 %v4577_v2  ;;  %v4785_v57 = vpack.c.bf16 %v342_v56, %v341_v55  ;;  %v344_v59 = vld [vmem:[%s5672_s4 + $0x28] sm:$0xff]  ;;  %v345_v61 = vld [vmem:[%s5672_s4 + $0x30] sm:$0xff]  ;;  %v346_v62 = vld [vmem:[%s5672_s4 + $0x38] sm:$0xff] }
   0xf   :  { %v4799_v60 = vpack.c.bf16 %v344_v59, %v343_v58  ;;  %v4811_v63 = vpack.c.bf16 %v346_v62, %v345_v61  ;;  %v347_v0 = vld [vmem:[%s5672_s4 + $0x40] sm:$0xff]  ;;  %v348_v1 = vld [vmem:[%s5672_s4 + $0x48] sm:$0xff]  ;;  %v34_v5 = vld [vmem:[%s5671_s0 + $0x10] sm:$0xff] }
  0x10   :  { %v4833_v3 = vpack.c.bf16 %v348_v1, %v347_v0  ;;  %v349_v6 = vld [vmem:[%s5672_s4 + $0x50] sm:$0xff]  ;;  %v350_v7 = vld [vmem:[%s5672_s4 + $0x58] sm:$0xff]  ;;  %v36_v11 = vld [vmem:[%s5671_s0 + $0x20] sm:$0xff] }
  0x11   :  { %3892 = vmatpush3.bf16.msra.mxu0 %v3889_v22  ;;  %3920 = vmatpush3.bf16.msra.mxu1 %v4701_v28  ;;  %v35_v8 = vld [vmem:[%s5671_s0 + $0x18] sm:$0xff]  ;;  %v4849_v10 = vpack.c.bf16 %v350_v7, %v349_v6  ;;  %v37_v12 = vld [vmem:[%s5671_s0 + $0x28] sm:$0xff]  ;;  %v351_v13 = vld [vmem:[%s5672_s4 + $0x60] sm:$0xff] }
  0x12   :  { %3894 = vmatprep.subr.bf16.mxu0 %v3893_v29  ;;  %3921 = vmatprep.subr.bf16.mxu1 %v4577_v2  ;;  %v352_v14 = vld [vmem:[%s5672_s4 + $0x68] sm:$0xff]  ;;  %v38_v16 = vld [vmem:[%s5671_s0 + $0x30] sm:$0xff]  ;;  %v354_v19 = vld [vmem:[%s5672_s4 + $0x78] sm:$0xff] }
  0x13   :  { %v4868_v17 = vpack.c.bf16 %v352_v14, %v351_v13  ;;  %v353_v18 = vld [vmem:[%s5672_s4 + $0x70] sm:$0xff]  ;;  %v39_v20 = vld [vmem:[%s5671_s0 + $0x38] sm:$0xff]  ;;  %v4890_v23 = vld [vmem:[%s5673_s3] ss:$0 sm:$0xff] }
  0x14   :  { %v4880_v22 = vpack.c.bf16 %v354_v19, %v353_v18  ;;  %v432_v31 = vld [vmem:[%s5674_s5] sm:$0xff]  ;;  %v433_v32 = vld [vmem:[%s5674_s5 + $0x8] sm:$0xff]  ;;  %v435_v36 = vld [vmem:[%s5674_s5 + $0x18] sm:$0xff] }
  0x15   :  { %3896 = vmatpush3.bf16.msra.mxu0 %v3893_v29  ;;  %3923 = vmatpush3.bf16.msra.mxu1 %v4717_v34  ;;  %v4901_v33 = vpack.c.bf16 %v433_v32, %v432_v31  ;;  %v436_v39 = vld [vmem:[%s5674_s5 + $0x20] sm:$0xff]  ;;  %v438_v43 = vld [vmem:[%s5674_s5 + $0x30] sm:$0xff]  ;;  %v439_v44 = vld [vmem:[%s5674_s5 + $0x38] sm:$0xff] }
  0x16   :  { %3898 = vmatprep.subr.bf16.mxu0 %v3897_v35  ;;  %3924 = vmatprep.subr.bf16.mxu1 %v4577_v2  ;;  %v4938_v45 = vpack.c.bf16 %v439_v44, %v438_v43  ;;  %v441_v48 = vld [vmem:[%s5674_s5 + $0x48] sm:$0xff]  ;;  %v442_v51 = vld [vmem:[%s5674_s5 + $0x50] sm:$0xff]  ;;  %v443_v52 = vld [vmem:[%s5674_s5 + $0x58] sm:$0xff] }
  0x17   :  { %v444_v55 = vld [vmem:[%s5674_s5 + $0x60] sm:$0xff]  ;;  %v445_v56 = vld [vmem:[%s5674_s5 + $0x68] sm:$0xff]  ;;  %v446_v59 = vld [vmem:[%s5674_s5 + $0x70] sm:$0xff] }
  0x18   :  { %v4974_v58 = vpack.c.bf16 %v445_v56, %v444_v55  ;;  %v447_v61 = vld [vmem:[%s5674_s5 + $0x78] sm:$0xff] }
  0x19   :  { %3900 = vmatpush3.bf16.msra.mxu0 %v3897_v35  ;;  %3926 = vmatpush3.bf16.msra.mxu1 %v4733_v40  ;;  %v434_v35 = vld [vmem:[%s5674_s5 + $0x10] sm:$0xff]  ;;  %v4986_v62 = vpack.c.bf16 %v447_v61, %v446_v59  ;;  %v1342_v32 = vld [vmem:[%s5670_s2 + $0x18] sm:$0xff] }
  0x1a   :  { %3902 = vmatprep.subr.bf16.mxu0 %v3901_v41  ;;  %3927 = vmatprep.subr.bf16.mxu1 %v4577_v2  ;;  %v4910_v38 = vpack.c.bf16 %v435_v36, %v434_v35  ;;  %v1343_v36 = vld [vmem:[%s5670_s2 + $0x20] sm:$0xff]  ;;  %v1346_v43 = vld [vmem:[%s5670_s2 + $0x38] sm:$0xff] }
  0x1d   :  { %3904 = vmatpush3.bf16.msra.mxu0 %v3901_v41  ;;  %3929 = vmatpush3.bf16.msra.mxu1 %v4749_v46  ;;  %v437_v41 = vld [vmem:[%s5674_s5 + $0x28] sm:$0xff] }
  0x1e   :  { %3906 = vmatprep.subr.bf16.mxu0 %v3905_v47  ;;  %3930 = vmatprep.subr.bf16.mxu1 %v4577_v2  ;;  %v4926_v42 = vpack.c.bf16 %v437_v41, %v436_v39  ;;  %v1345_v41 = vld [vmem:[%s5670_s2 + $0x30] sm:$0xff] }
  0x1f   :  { %v5170_v44 = vpack.c.bf16 %v1346_v43, %v1345_v41  ;;  %v1520_v43 = vld [vmem:[%s5674_s5] sm:$0xff] }
  0x21   :  { %3908 = vmatpush3.bf16.msra.mxu0 %v3905_v47  ;;  %3932 = vmatpush3.bf16.msra.mxu1 %v4759_v50  ;;  %v440_v47 = vld [vmem:[%s5674_s5 + $0x40] sm:$0xff] }
  0x22   :  { %3957 = vmatprep.subr.bf16.mxu1 %v4577_v2  ;;  %3933 = vmatprep.subr.bf16.mxu0 %v4577_v2  ;;  %v4950_v49 = vpack.c.bf16 %v441_v48, %v440_v47  ;;  %v1347_v47 = vld [vmem:[%s5670_s2 + $0x40] sm:$0xff]  ;;  %v1348_v48 = vld [vmem:[%s5670_s2 + $0x48] sm:$0xff] }
  0x24   :  { %2982 = vmatmul.mubr.f32.vlgmr.msra.gmra.mrb[0].mxu0 %v33_v53  ;;  %3026 = vmatmul.mubr.f32.vlgmr.msra.gmra.mrb[0].mxu1 %v4579_v4  ;;  %v4962_v53 = vpack.c.bf16 %v443_v52, %v442_v51  ;;  %v5180_v51 = vpack.c.bf16 %v1348_v48, %v1347_v47  ;;  %v1521_v47 = vld [vmem:[%s5674_s5 + $0x8] sm:$0xff] }
  0x25   :  { %3959 = vmatpush3.bf16.msra.mxu1 %v4772_v54  ;;  %3935 = vmatpush3.bf16.msra.mxu0 %v4651_v9  ;;  %v5364_v48 = vpack.c.bf16 %v1521_v47, %v1520_v43  ;;  %v2351_v47 = vld [vmem:[%s5676_s7 + $0x40] sm:$0xff] }
  0x26   :  { %3960 = vmatprep.subr.bf16.mxu1 %v4577_v2  ;;  %3936 = vmatprep.subr.bf16.mxu0 %v4577_v2 }
  0x27   :  { %3095 = vmatprep.mubr.msk.f32.mxu1 %vm4578_vm0, %v4579_v4  ;;  %2984 = vmatprep.mubr.f32.mxu0 %v34_v5 }
  0x28   :  { %2985 = vmatmul.mubr.f32.gmra.mrb[2].mxu0 %v35_v8 }
  0x29   :  { %3962 = vmatpush3.bf16.msra.mxu1 %v4785_v57  ;;  %3938 = vmatpush3.bf16.msra.mxu0 %v4666_v15 }
  0x2a   :  { %3963 = vmatprep.subr.bf16.mxu1 %v4577_v2  ;;  %3939 = vmatprep.subr.bf16.mxu0 %v4577_v2 }
  0x2b   :  { %2987 = vmatprep.mubr.f32.mxu0 %v36_v11 }
  0x2c   :  { %2988 = vmatmul.mubr.f32.gmra.mrb[4].mxu0 %v37_v12 }
  0x2d   :  { %3965 = vmatpush3.bf16.msra.mxu1 %v4799_v60  ;;  %3941 = vmatpush3.bf16.msra.mxu0 %v4682_v21 }
  0x2e   :  { %3966 = vmatprep.subr.bf16.mxu1 %v4577_v2  ;;  %3942 = vmatprep.subr.bf16.mxu0 %v4577_v2 }
  0x2f   :  { %2990 = vmatprep.mubr.f32.mxu0 %v38_v16 }
  0x30   :  { %2991 = vmatmul.mubr.f32.gmra.mrb[6].mxu0 %v39_v20  ;;  %v5058_v20 = vld [vmem:[%s5675_s6] ss:$0 sm:$0xff] }
  0x31   :  { %3968 = vmatpush3.bf16.msra.mxu1 %v4811_v63  ;;  %3944 = vmatpush3.bf16.msra.mxu0 %v4701_v28 }
  0x32   :  { %3969 = vmatprep.subr.bf16.mxu1 %v4577_v2  ;;  %3945 = vmatprep.subr.bf16.mxu0 %v4577_v2 }
  0x33   :  { %3060 = vmatprep.mubr.msk.f32.mxu0 %vm4578_vm0, %v4579_v4 }
  0x35   :  { %3947 = vmatpush3.bf16.msra.mxu0 %v4717_v34  ;;  %3971 = vmatpush3.bf16.msra.mxu1 %v4833_v3 }
  0x36   :  { %3948 = vmatprep.subr.bf16.mxu0 %v4577_v2  ;;  %3972 = vmatprep.subr.bf16.mxu1 %v4577_v2 }
  0x39   :  { %3950 = vmatpush3.bf16.msra.mxu0 %v4733_v40  ;;  %3974 = vmatpush3.bf16.msra.mxu1 %v4849_v10 }
  0x3a   :  { %3951 = vmatprep.subr.bf16.mxu0 %v4577_v2  ;;  %3975 = vmatprep.subr.bf16.mxu1 %v4577_v2 }
  0x3d   :  { %3953 = vmatpush3.bf16.msra.mxu0 %v4749_v46  ;;  %3977 = vmatpush3.bf16.msra.mxu1 %v4868_v17 }
  0x3e   :  { %3954 = vmatprep.subr.bf16.mxu0 %v4577_v2  ;;  %3978 = vmatprep.subr.bf16.mxu1 %v4577_v2 }
  0x41   :  { %3956 = vmatpush3.bf16.msra.mxu0 %v4759_v50  ;;  %3980 = vmatpush3.bf16.msra.mxu1 %v4880_v22 }
  0x42   :  { %4005 = vmatprep.subr.bf16.mxu0 %v4577_v2  ;;  %3981 = vmatprep.subr.bf16.mxu1 %v4577_v2 }
  0xf7   :  { %v4892_v24 = vpop.f32.mrb[0].mxu0  ;;  %v259_v25 = vpop.f32.mrb[0].mxu1 }
  0xf8   :  { %v129_v26 = vpop.f32.mrb[1].mxu0  ;;  %v3027_v27 = vpop.f32.mrb[1].mxu1  ;;  %v135_v11 = vadd.f32 %v4892_v24, %v4890_v23 }
  0xf9   :  { %v130_v29 = vadd.f32 %v4890_v23, %v129_v26  ;;  %v1339_v27 = vld [vmem:[%s5670_s2] sm:$0xff] }
  0xfb   :  { %v263_v30 = vadd.f32 %v259_v25, %v130_v29  ;;  %v5014_v0 = vpop.f32.mrb[2].mxu0  ;;  %v1340_v29 = vld [vmem:[%s5670_s2 + $0x8] sm:$0xff] }
  0xfc   :  { %v5016_v1 = vpop.f32.mrb[3].mxu0  ;;  %v5144_v31 = vpack.c.bf16 %v1340_v29, %v1339_v27  ;;  %v145_v52 = vadd.f32 %v5014_v0, %v4890_v23  ;;  %v1439_v29 = vld [vmem:[%s5672_s4 + $0x60] sm:$0xff] }
  0xfd   :  { %4544 = vtanh.f32 %v263_v30  ;;  %v1341_v30 = vld [vmem:[%s5670_s2 + $0x10] sm:$0xff] }
  0xfe   :  { %v5150_v35 = vpack.c.bf16 %v1342_v32, %v1341_v30  ;;  %v1440_v30 = vld [vmem:[%s5672_s4 + $0x68] sm:$0xff] }
  0xff   :  { %v5018_v5 = vpop.f32.mrb[4].mxu0  ;;  %v5344_v32 = vpack.c.bf16 %v1440_v30, %v1439_v29  ;;  %v2347_v30 = vld [vmem:[%s5676_s7 + $0x20] sm:$0xff] }
 0x100   :  { %v5020_v6 = vpop.f32.mrb[5].mxu0 }
 0x103   :  { %v5022_v7 = vpop.f32.mrb[6].mxu0 }
 0x104   :  { %v5024_v8 = vpop.f32.mrb[7].mxu0 }
 0x107   :  { %v4545_v37 = vpop.eup %4544 }
 0x108   :  { %3061 = vmatmul.mubr.f32.vlgmr.msra.gmra.mrb[8].mxu0 %v4545_v37  ;;  %3096 = vmatmul.mubr.f32.vlgmr.msra.gmra.mrb[2].mxu1 %v4545_v37  ;;  %v1344_v37 = vld [vmem:[%s5670_s2 + $0x28] sm:$0xff] }
 0x109   :  { %3983 = vmatpush3.bf16.msra.mxu1 %v4901_v33  ;;  %3130 = vmatprep.mubr.msk.f32.mxu1 %vm4578_vm0, %v4579_v4  ;;  %v5160_v39 = vpack.c.bf16 %v1344_v37, %v1343_v36  ;;  %v1441_v36 = vld [vmem:[%s5672_s4 + $0x70] sm:$0xff]  ;;  %v1442_v37 = vld [vmem:[%s5672_s4 + $0x78] sm:$0xff] }
 0x10a   :  { %3984 = vmatprep.subr.bf16.mxu1 %v4577_v2  ;;  %4007 = vmatpush3.bf16.msra.mxu0 %v4651_v9  ;;  %v5354_v41 = vpack.c.bf16 %v1442_v37, %v1441_v36  ;;  %v2349_v37 = vld [vmem:[%s5676_s7 + $0x30] sm:$0xff] }
 0x10b   :  { %4008 = vmatprep.subr.bf16.mxu0 %v4577_v2  ;;  %3165 = vmatprep.mubr.msk.f32.mxu0 %vm4578_vm0, %v4579_v4 }
 0x10d   :  { %3986 = vmatpush3.bf16.msra.mxu1 %v4910_v38 }
 0x10e   :  { %3987 = vmatprep.subr.bf16.mxu1 %v4577_v2  ;;  %4010 = vmatpush3.bf16.msra.mxu0 %v4666_v15 }
 0x10f   :  { %4011 = vmatprep.subr.bf16.mxu0 %v4577_v2 }
 0x111   :  { %3989 = vmatpush3.bf16.msra.mxu1 %v4926_v42 }
 0x112   :  { %3990 = vmatprep.subr.bf16.mxu1 %v4577_v2  ;;  %4013 = vmatpush3.bf16.msra.mxu0 %v4682_v21 }
 0x113   :  { %4014 = vmatprep.subr.bf16.mxu0 %v4577_v2 }
 0x115   :  { %3992 = vmatpush3.bf16.msra.mxu1 %v4938_v45 }
 0x116   :  { %3993 = vmatprep.subr.bf16.mxu1 %v4577_v2  ;;  %4016 = vmatpush3.bf16.msra.mxu0 %v4701_v28 }
 0x117   :  { %4017 = vmatprep.subr.bf16.mxu0 %v4577_v2 }
 0x119   :  { %3995 = vmatpush3.bf16.msra.mxu1 %v4950_v49 }
 0x11a   :  { %3996 = vmatprep.subr.bf16.mxu1 %v4577_v2  ;;  %4019 = vmatpush3.bf16.msra.mxu0 %v4717_v34 }
 0x11b   :  { %4020 = vmatprep.subr.bf16.mxu0 %v4577_v2 }
 0x11d   :  { %3998 = vmatpush3.bf16.msra.mxu1 %v4962_v53 }
 0x11e   :  { %3999 = vmatprep.subr.bf16.mxu1 %v4577_v2  ;;  %4022 = vmatpush3.bf16.msra.mxu0 %v4733_v40 }
 0x11f   :  { %4023 = vmatprep.subr.bf16.mxu0 %v4577_v2 }
 0x121   :  { %4001 = vmatpush3.bf16.msra.mxu1 %v4974_v58 }
 0x122   :  { %4002 = vmatprep.subr.bf16.mxu1 %v4577_v2  ;;  %4025 = vmatpush3.bf16.msra.mxu0 %v4749_v46 }
 0x123   :  { %4026 = vmatprep.subr.bf16.mxu0 %v4577_v2 }
 0x125   :  { %4004 = vmatpush3.bf16.msra.mxu1 %v4986_v62 }
 0x126   :  { %4028 = vmatpush3.bf16.msra.mxu0 %v4759_v50  ;;  %4077 = vmatprep.subr.bf16.mxu1 %v4577_v2 }
 0x127   :  { %4029 = vmatprep.subr.bf16.mxu0 %v4577_v2 }
 0x128   :  { %3131 = vmatmul.mubr.f32.vlgmr.msra.gmra.mrb[2].mxu1 %v4579_v4 }
 0x129   :  { %4079 = vmatpush3.bf16.msra.mxu1 %v4651_v9  ;;  %3270 = vmatprep.mubr.msk.f32.mxu1 %vm4578_vm0, %v4579_v4 }
 0x12a   :  { %4080 = vmatprep.subr.bf16.mxu1 %v4577_v2 }
 0x12d   :  { %4082 = vmatpush3.bf16.msra.mxu1 %v4666_v15 }
 0x12e   :  { %4083 = vmatprep.subr.bf16.mxu1 %v4577_v2 }
 0x131   :  { %4085 = vmatpush3.bf16.msra.mxu1 %v4682_v21 }
 0x132   :  { %4086 = vmatprep.subr.bf16.mxu1 %v4577_v2 }
 0x135   :  { %4088 = vmatpush3.bf16.msra.mxu1 %v4701_v28 }
 0x136   :  { %4089 = vmatprep.subr.bf16.mxu1 %v4577_v2 }
 0x139   :  { %4091 = vmatpush3.bf16.msra.mxu1 %v4717_v34 }
 0x13a   :  { %4092 = vmatprep.subr.bf16.mxu1 %v4577_v2 }
 0x13d   :  { %4094 = vmatpush3.bf16.msra.mxu1 %v4733_v40 }
 0x13e   :  { %4095 = vmatprep.subr.bf16.mxu1 %v4577_v2 }
 0x141   :  { %4097 = vmatpush3.bf16.msra.mxu1 %v4749_v46 }
 0x142   :  { %4098 = vmatprep.subr.bf16.mxu1 %v4577_v2 }
 0x145   :  { %4100 = vmatpush3.bf16.msra.mxu1 %v4759_v50 }
 0x146   :  { %4101 = vmatprep.subr.bf16.mxu1 %v4577_v2 }
 0x1db   :  { %v333_v12 = vpop.f32.mrb[8].mxu0 }
 0x1dc   :  { %v337_v13 = vadd.f32 %v333_v12, %v135_v11  ;;  %v3062_v14 = vpop.f32.mrb[9].mxu0  ;;  %v1428_v11 = vld [vmem:[%s5672_s4 + $0x8] sm:$0xff] }
 0x1de   :  { %4546 = vtanh.f32 %v337_v13  ;;  %v1429_v13 = vld [vmem:[%s5672_s4 + $0x10] sm:$0xff] }
 0x1e8   :  { %v4547_v16 = vpop.eup %4546 }
 0x1e9   :  { %3166 = vmatmul.mubr.f32.vlgmr.msra.gmra.mrb[10].mxu0 %v4547_v16 }
 0x1ea   :  { %4031 = vmatpush3.bf16.msra.mxu0 %v4772_v54  ;;  %3200 = vmatprep.mubr.msk.f32.mxu0 %vm4578_vm0, %v4579_v4 }
 0x1eb   :  { %4032 = vmatprep.subr.bf16.mxu0 %v4577_v2 }
 0x1ee   :  { %4034 = vmatpush3.bf16.msra.mxu0 %v4785_v57 }
 0x1ef   :  { %4035 = vmatprep.subr.bf16.mxu0 %v4577_v2 }
 0x1f2   :  { %4037 = vmatpush3.bf16.msra.mxu0 %v4799_v60 }
 0x1f3   :  { %4038 = vmatprep.subr.bf16.mxu0 %v4577_v2 }
 0x1f6   :  { %4040 = vmatpush3.bf16.msra.mxu0 %v4811_v63 }
 0x1f7   :  { %4041 = vmatprep.subr.bf16.mxu0 %v4577_v2 }
 0x1fa   :  { %4043 = vmatpush3.bf16.msra.mxu0 %v4833_v3 }
 0x1fb   :  { %v514_v18 = vpop.f32.mrb[2].mxu1  ;;  %4044 = vmatprep.subr.bf16.mxu0 %v4577_v2 }
 0x1fc   :  { %v3132_v19 = vpop.f32.mrb[3].mxu1  ;;  %v4517_v24 = vadd.f32 %v5058_v20, %v514_v18  ;;  %v1431_v18 = vld [vmem:[%s5672_s4 + $0x20] sm:$0xff] }
 0x1fd   :  { %v1432_v19 = vld [vmem:[%s5672_s4 + $0x28] sm:$0xff] }
 0x1fe   :  { %4046 = vmatpush3.bf16.msra.mxu0 %v4849_v10  ;;  %4548 = vtanh.f32 %v4517_v24  ;;  %v5304_v24 = vpack.c.bf16 %v1432_v19, %v1431_v18 }
 0x1ff   :  { %4047 = vmatprep.subr.bf16.mxu0 %v4577_v2 }
 0x202   :  { %4049 = vmatpush3.bf16.msra.mxu0 %v4868_v17 }
 0x203   :  { %4050 = vmatprep.subr.bf16.mxu0 %v4577_v2 }
 0x206   :  { %4052 = vmatpush3.bf16.msra.mxu0 %v4880_v22 }
 0x207   :  { %4053 = vmatprep.subr.bf16.mxu0 %v4577_v2 }
 0x208   :  { %v5070_v25 = vpop.eup %4548 }
 0x209   :  { %3201 = vmatmul.mubr.f32.vlgmr.msra.gmra.mrb[12].mxu0 %v4547_v16 }
 0x20a   :  { %4055 = vmatpush3.bf16.msra.mxu0 %v4901_v33  ;;  %3235 = vmatprep.mubr.msk.f32.mxu0 %vm4578_vm0, %v4579_v4 }
 0x20b   :  { %4056 = vmatprep.subr.bf16.mxu0 %v4577_v2 }
 0x20e   :  { %4058 = vmatpush3.bf16.msra.mxu0 %v4910_v38 }
 0x20f   :  { %4059 = vmatprep.subr.bf16.mxu0 %v4577_v2 }
 0x212   :  { %4061 = vmatpush3.bf16.msra.mxu0 %v4926_v42 }
 0x213   :  { %4062 = vmatprep.subr.bf16.mxu0 %v4577_v2 }
 0x216   :  { %4064 = vmatpush3.bf16.msra.mxu0 %v4938_v45 }
 0x217   :  { %4065 = vmatprep.subr.bf16.mxu0 %v4577_v2 }
 0x21a   :  { %4067 = vmatpush3.bf16.msra.mxu0 %v4950_v49 }
 0x21b   :  { %4068 = vmatprep.subr.bf16.mxu0 %v4577_v2 }
 0x21e   :  { %4070 = vmatpush3.bf16.msra.mxu0 %v4962_v53 }
 0x21f   :  { %4071 = vmatprep.subr.bf16.mxu0 %v4577_v2 }
 0x222   :  { %4073 = vmatpush3.bf16.msra.mxu0 %v4974_v58 }
 0x223   :  { %4074 = vmatprep.subr.bf16.mxu0 %v4577_v2 }
 0x226   :  { %4076 = vmatpush3.bf16.msra.mxu0 %v4986_v62 }
 0x227   :  { %4149 = vmatprep.subr.bf16.mxu0 %v4577_v2 }
 0x229   :  { %3236 = vmatmul.mubr.f32.vlgmr.msra.gmra.mrb[12].mxu0 %v5070_v25 }
 0x22a   :  { %4151 = vmatpush3.bf16.msra.mxu0 %v4651_v9  ;;  %3375 = vmatprep.mubr.msk.f32.mxu0 %vm4578_vm0, %v4579_v4  ;;  %v140_v9 = vadd.f32 %v4890_v23, %v5016_v1  ;;  %v1427_v1 = vld [vmem:[%s5672_s4] sm:$0xff] }
 0x22b   :  { %4152 = vmatprep.subr.bf16.mxu0 %v4577_v2  ;;  %v5283_v12 = vpack.c.bf16 %v1428_v11, %v1427_v1 }
 0x22e   :  { %4154 = vmatpush3.bf16.msra.mxu0 %v4666_v15 }
 0x22f   :  { %4155 = vmatprep.subr.bf16.mxu0 %v4577_v2 }
 0x232   :  { %4157 = vmatpush3.bf16.msra.mxu0 %v4682_v21 }
 0x233   :  { %4158 = vmatprep.subr.bf16.mxu0 %v4577_v2 }
 0x236   :  { %4160 = vmatpush3.bf16.msra.mxu0 %v4701_v28 }
 0x237   :  { %4161 = vmatprep.subr.bf16.mxu0 %v4577_v2 }
 0x23a   :  { %4163 = vmatpush3.bf16.msra.mxu0 %v4717_v34 }
 0x23b   :  { %4164 = vmatprep.subr.bf16.mxu0 %v4577_v2 }
 0x23e   :  { %4166 = vmatpush3.bf16.msra.mxu0 %v4733_v40 }
 0x23f   :  { %4167 = vmatprep.subr.bf16.mxu0 %v4577_v2 }
 0x242   :  { %4169 = vmatpush3.bf16.msra.mxu0 %v4749_v46 }
 0x243   :  { %4170 = vmatprep.subr.bf16.mxu0 %v4577_v2 }
 0x246   :  { %4172 = vmatpush3.bf16.msra.mxu0 %v4759_v50 }
 0x247   :  { %4173 = vmatprep.subr.bf16.mxu0 %v4577_v2 }
 0x2bc   :  { %v605_v15 = vpop.f32.mrb[10].mxu0 }
 0x2bd   :  { %v609_v21 = vadd.f32 %v605_v15, %v140_v9  ;;  %v3167_v28 = vpop.f32.mrb[11].mxu0  ;;  %v1433_v9 = vld [vmem:[%s5672_s4 + $0x30] sm:$0xff]  ;;  %v1434_v15 = vld [vmem:[%s5672_s4 + $0x38] sm:$0xff] }
 0x2be   :  { %v1435_v28 = vld [vmem:[%s5672_s4 + $0x40] sm:$0xff] }
 0x2bf   :  { %4550 = vtanh.f32 %v609_v21  ;;  %v5314_v21 = vpack.c.bf16 %v1434_v15, %v1433_v9  ;;  %v160_v9 = vadd.f32 %v4890_v23, %v5024_v8 }
 0x2c9   :  { %v4551_v34 = vpop.eup %4550 }
 0x2ca   :  { %3271 = vmatmul.mubr.f32.vlgmr.msra.gmra.mrb[4].mxu1 %v4551_v34 }
 0x2cb   :  { %4103 = vmatpush3.bf16.msra.mxu1 %v4772_v54  ;;  %3305 = vmatprep.mubr.msk.f32.mxu1 %vm4578_vm0, %v4579_v4 }
 0x2cc   :  { %4104 = vmatprep.subr.bf16.mxu1 %v4577_v2 }
 0x2cf   :  { %4106 = vmatpush3.bf16.msra.mxu1 %v4785_v57 }
 0x2d0   :  { %4107 = vmatprep.subr.bf16.mxu1 %v4577_v2 }
 0x2d3   :  { %4109 = vmatpush3.bf16.msra.mxu1 %v4799_v60 }
 0x2d4   :  { %4110 = vmatprep.subr.bf16.mxu1 %v4577_v2 }
 0x2d7   :  { %4112 = vmatpush3.bf16.msra.mxu1 %v4811_v63 }
 0x2d8   :  { %4113 = vmatprep.subr.bf16.mxu1 %v4577_v2 }
 0x2db   :  { %4115 = vmatpush3.bf16.msra.mxu1 %v4833_v3 }
 0x2dc   :  { %4116 = vmatprep.subr.bf16.mxu1 %v4577_v2 }
 0x2df   :  { %4118 = vmatpush3.bf16.msra.mxu1 %v4849_v10 }
 0x2e0   :  { %4119 = vmatprep.subr.bf16.mxu1 %v4577_v2 }
 0x2e3   :  { %4121 = vmatpush3.bf16.msra.mxu1 %v4868_v17 }
 0x2e4   :  { %4122 = vmatprep.subr.bf16.mxu1 %v4577_v2 }
 0x2e7   :  { %4124 = vmatpush3.bf16.msra.mxu1 %v4880_v22 }
 0x2e8   :  { %4125 = vmatprep.subr.bf16.mxu1 %v4577_v2 }
 0x2ea   :  { %3306 = vmatmul.mubr.f32.vlgmr.msra.gmra.mrb[6].mxu1 %v4551_v34  ;;  %v1436_v34 = vld [vmem:[%s5672_s4 + $0x48] sm:$0xff] }
 0x2eb   :  { %4127 = vmatpush3.bf16.msra.mxu1 %v4901_v33  ;;  %3340 = vmatprep.mubr.msk.f32.mxu1 %vm4578_vm0, %v4579_v4 }
 0x2ec   :  { %4128 = vmatprep.subr.bf16.mxu1 %v4577_v2 }
 0x2ef   :  { %4130 = vmatpush3.bf16.msra.mxu1 %v4910_v38 }
 0x2f0   :  { %4131 = vmatprep.subr.bf16.mxu1 %v4577_v2 }
 0x2f3   :  { %4133 = vmatpush3.bf16.msra.mxu1 %v4926_v42 }
 0x2f4   :  { %4134 = vmatprep.subr.bf16.mxu1 %v4577_v2 }
 0x2f7   :  { %4136 = vmatpush3.bf16.msra.mxu1 %v4938_v45 }
 0x2f8   :  { %4137 = vmatprep.subr.bf16.mxu1 %v4577_v2 }
 0x2fb   :  { %4139 = vmatpush3.bf16.msra.mxu1 %v4950_v49 }
 0x2fc   :  { %v786_v40 = vpop.f32.mrb[12].mxu0  ;;  %4140 = vmatprep.subr.bf16.mxu1 %v4577_v2 }
 0x2fd   :  { %v4518_v46 = vadd.f32 %v5058_v20, %v786_v40  ;;  %v3237_v50 = vpop.f32.mrb[13].mxu0  ;;  %v5324_v40 = vpack.c.bf16 %v1436_v34, %v1435_v28 }
 0x2fe   :  { %v1438_v50 = vld [vmem:[%s5672_s4 + $0x58] sm:$0xff] }
 0x2ff   :  { %4552 = vtanh.f32 %v4518_v46  ;;  %4142 = vmatpush3.bf16.msra.mxu1 %v4962_v53  ;;  %v1437_v46 = vld [vmem:[%s5672_s4 + $0x50] sm:$0xff] }
 0x300   :  { %4143 = vmatprep.subr.bf16.mxu1 %v4577_v2  ;;  %v5334_v27 = vpack.c.bf16 %v1438_v50, %v1437_v46  ;;  %v2346_v50 = vld [vmem:[%s5676_s7 + $0x18] sm:$0xff] }
 0x303   :  { %4145 = vmatpush3.bf16.msra.mxu1 %v4974_v58 }
 0x304   :  { %4146 = vmatprep.subr.bf16.mxu1 %v4577_v2 }
 0x307   :  { %4148 = vmatpush3.bf16.msra.mxu1 %v4986_v62 }
 0x308   :  { %4221 = vmatprep.subr.bf16.mxu1 %v4577_v2 }
 0x309   :  { %v5130_v26 = vpop.eup %4552 }
 0x30a   :  { %3341 = vmatmul.mubr.f32.vlgmr.msra.gmra.mrb[6].mxu1 %v5130_v26 }
 0x30b   :  { %3480 = vmatprep.mubr.msk.f32.mxu1 %vm4578_vm0, %v4579_v4  ;;  %4223 = vmatpush3.bf16.msra.mxu1 %v5144_v31 }
 0x30c   :  { %4224 = vmatprep.subr.bf16.mxu1 %v4577_v2 }
 0x30f   :  { %4226 = vmatpush3.bf16.msra.mxu1 %v5150_v35 }
 0x310   :  { %4227 = vmatprep.subr.bf16.mxu1 %v4577_v2 }
 0x313   :  { %4229 = vmatpush3.bf16.msra.mxu1 %v5160_v39 }
 0x314   :  { %4230 = vmatprep.subr.bf16.mxu1 %v4577_v2 }
 0x317   :  { %4232 = vmatpush3.bf16.msra.mxu1 %v5170_v44 }
 0x318   :  { %4233 = vmatprep.subr.bf16.mxu1 %v4577_v2 }
 0x31b   :  { %4235 = vmatpush3.bf16.msra.mxu1 %v5180_v51 }
 0x31c   :  { %4236 = vmatprep.subr.bf16.mxu1 %v4577_v2 }
 0x39d   :  { %v877_v55 = vpop.f32.mrb[4].mxu1 }
 0x39e   :  { %v881_v56 = vadd.f32 %v877_v55, %v145_v52  ;;  %v3272_v59 = vpop.f32.mrb[5].mxu1  ;;  %v1522_v52 = vld [vmem:[%s5674_s5 + $0x10] sm:$0xff]  ;;  %v1523_v55 = vld [vmem:[%s5674_s5 + $0x18] sm:$0xff] }
 0x39f   :  { %v1524_v59 = vld [vmem:[%s5674_s5 + $0x20] sm:$0xff] }
 0x3a0   :  { %4554 = vtanh.f32 %v881_v56  ;;  %v5374_v56 = vpack.c.bf16 %v1523_v55, %v1522_v52  ;;  %v2353_v55 = vld [vmem:[%s5676_s7 + $0x50] sm:$0xff] }
 0x3aa   :  { %v4555_v61 = vpop.eup %4554 }
 0x3ab   :  { %3376 = vmatmul.mubr.f32.vlgmr.msra.gmra.mrb[14].mxu0 %v4555_v61 }
 0x3ac   :  { %4175 = vmatpush3.bf16.msra.mxu0 %v4772_v54  ;;  %3410 = vmatprep.mubr.msk.f32.mxu0 %vm4578_vm0, %v4579_v4 }
 0x3ad   :  { %4176 = vmatprep.subr.bf16.mxu0 %v4577_v2 }
 0x3b0   :  { %4178 = vmatpush3.bf16.msra.mxu0 %v4785_v57 }
 0x3b1   :  { %4179 = vmatprep.subr.bf16.mxu0 %v4577_v2 }
 0x3b4   :  { %4181 = vmatpush3.bf16.msra.mxu0 %v4799_v60 }
 0x3b5   :  { %4182 = vmatprep.subr.bf16.mxu0 %v4577_v2 }
 0x3b8   :  { %4184 = vmatpush3.bf16.msra.mxu0 %v4811_v63 }
 0x3b9   :  { %4185 = vmatprep.subr.bf16.mxu0 %v4577_v2 }
 0x3bc   :  { %4187 = vmatpush3.bf16.msra.mxu0 %v4833_v3  ;;  %v1349_v3 = vld [vmem:[%s5670_s2 + $0x50] sm:$0xff] }
 0x3bd   :  { %4188 = vmatprep.subr.bf16.mxu0 %v4577_v2 }
 0x3c0   :  { %4190 = vmatpush3.bf16.msra.mxu0 %v4849_v10  ;;  %v1350_v10 = vld [vmem:[%s5670_s2 + $0x58] sm:$0xff] }
 0x3c1   :  { %4191 = vmatprep.subr.bf16.mxu0 %v4577_v2 }
 0x3c4   :  { %4193 = vmatpush3.bf16.msra.mxu0 %v4868_v17  ;;  %v5245_v17 = vpack.c.bf16 %v1350_v10, %v1349_v3  ;;  %v1528_v10 = vld [vmem:[%s5674_s5 + $0x40] sm:$0xff] }
 0x3c5   :  { %4194 = vmatprep.subr.bf16.mxu0 %v4577_v2 }
 0x3c6   :  { %4238 = vmatpush3.bf16.msra.mxu1 %v5245_v17 }
 0x3c7   :  { %4239 = vmatprep.subr.bf16.mxu1 %v4577_v2 }
 0x3c8   :  { %4196 = vmatpush3.bf16.msra.mxu0 %v4880_v22  ;;  %v1351_v22 = vld [vmem:[%s5670_s2 + $0x60] sm:$0xff] }
 0x3c9   :  { %4197 = vmatprep.subr.bf16.mxu0 %v4577_v2 }
 0x3cb   :  { %3411 = vmatmul.mubr.f32.vlgmr.msra.gmra.mrb[16].mxu0 %v4555_v61  ;;  %v1525_v61 = vld [vmem:[%s5674_s5 + $0x28] sm:$0xff] }
 0x3cc   :  { %4199 = vmatpush3.bf16.msra.mxu0 %v4901_v33  ;;  %3445 = vmatprep.mubr.msk.f32.mxu0 %vm4578_vm0, %v4579_v4  ;;  %v1352_v33 = vld [vmem:[%s5670_s2 + $0x68] sm:$0xff] }
 0x3cd   :  { %4200 = vmatprep.subr.bf16.mxu0 %v4577_v2 }
 0x3d0   :  { %4202 = vmatpush3.bf16.msra.mxu0 %v4910_v38  ;;  %v5256_v38 = vpack.c.bf16 %v1352_v33, %v1351_v22  ;;  %v1529_v22 = vld [vmem:[%s5674_s5 + $0x48] sm:$0xff] }
 0x3d1   :  { %4203 = vmatprep.subr.bf16.mxu0 %v4577_v2  ;;  %v5406_v33 = vpack.c.bf16 %v1529_v22, %v1528_v10  ;;  %v2357_v22 = vld [vmem:[%s5676_s7 + $0x70] sm:$0xff] }
 0x3d2   :  { %4241 = vmatpush3.bf16.msra.mxu1 %v5256_v38 }
 0x3d3   :  { %4242 = vmatprep.subr.bf16.mxu1 %v4577_v2 }
 0x3d4   :  { %4205 = vmatpush3.bf16.msra.mxu0 %v4926_v42  ;;  %v1353_v42 = vld [vmem:[%s5670_s2 + $0x70] sm:$0xff] }
 0x3d5   :  { %4206 = vmatprep.subr.bf16.mxu0 %v4577_v2 }
 0x3d8   :  { %4208 = vmatpush3.bf16.msra.mxu0 %v4938_v45  ;;  %v1354_v45 = vld [vmem:[%s5670_s2 + $0x78] sm:$0xff] }
 0x3d9   :  { %4209 = vmatprep.subr.bf16.mxu0 %v4577_v2 }
 0x3dc   :  { %4211 = vmatpush3.bf16.msra.mxu0 %v4950_v49  ;;  %v5266_v49 = vpack.c.bf16 %v1354_v45, %v1353_v42  ;;  %v1530_v42 = vld [vmem:[%s5674_s5 + $0x50] sm:$0xff]  ;;  %v1531_v45 = vld [vmem:[%s5674_s5 + $0x58] sm:$0xff] }
 0x3dd   :  { %v1058_v54 = vpop.f32.mrb[6].mxu1  ;;  %4212 = vmatprep.subr.bf16.mxu0 %v4577_v2 }
 0x3de   :  { %v4519_v57 = vadd.f32 %v5058_v20, %v1058_v54  ;;  %v3342_v60 = vpop.f32.mrb[7].mxu1  ;;  %4244 = vmatpush3.bf16.msra.mxu1 %v5266_v49  ;;  %v5386_v54 = vpack.c.bf16 %v1525_v61, %v1524_v59  ;;  %v2354_v59 = vld [vmem:[%s5676_s7 + $0x58] sm:$0xff] }
 0x3df   :  { %4245 = vmatprep.subr.bf16.mxu1 %v4577_v2  ;;  %v1527_v60 = vld [vmem:[%s5674_s5 + $0x38] sm:$0xff]  ;;  %v4505_v61 = vpack.c.bf16 %v2354_v59, %v2353_v55 }
 0x3e0   :  { %4556 = vtanh.f32 %v4519_v57  ;;  %4214 = vmatpush3.bf16.msra.mxu0 %v4962_v53  ;;  %v150_v53 = vadd.f32 %v4890_v23, %v5020_v6  ;;  %v1430_v6 = vld [vmem:[%s5672_s4 + $0x18] sm:$0xff]  ;;  %v1526_v57 = vld [vmem:[%s5674_s5 + $0x30] sm:$0xff] }
 0x3e1   :  { %4215 = vmatprep.subr.bf16.mxu0 %v4577_v2  ;;  %v5292_v16 = vpack.c.bf16 %v1430_v6, %v1429_v13  ;;  %v5396_v3 = vpack.c.bf16 %v1527_v60, %v1526_v57  ;;  %v1534_v6 = vld [vmem:[%s5674_s5 + $0x70] sm:$0xff]  ;;  %v2355_v57 = vld [vmem:[%s5676_s7 + $0x60] sm:$0xff]  ;;  %v2356_v60 = vld [vmem:[%s5676_s7 + $0x68] sm:$0xff] }
 0x3e2   :  { %v4509_v10 = vpack.c.bf16 %v2356_v60, %v2355_v57 }
 0x3e4   :  { %4217 = vmatpush3.bf16.msra.mxu0 %v4974_v58 }
 0x3e5   :  { %4218 = vmatprep.subr.bf16.mxu0 %v4577_v2 }
 0x3e8   :  { %4220 = vmatpush3.bf16.msra.mxu0 %v4986_v62 }
 0x3e9   :  { %4293 = vmatprep.subr.bf16.mxu0 %v4577_v2 }
 0x3ea   :  { %v5224_v63 = vpop.eup %4556 }
 0x3eb   :  { %3446 = vmatmul.mubr.f32.vlgmr.msra.gmra.mrb[16].mxu0 %v5224_v63 }
 0x3ec   :  { %4295 = vmatpush3.bf16.msra.mxu0 %v5144_v31  ;;  %3585 = vmatprep.mubr.msk.f32.mxu0 %vm4578_vm0, %v4579_v4 }
 0x3ed   :  { %4296 = vmatprep.subr.bf16.mxu0 %v4577_v2 }
 0x3f0   :  { %4298 = vmatpush3.bf16.msra.mxu0 %v5150_v35 }
 0x3f1   :  { %4299 = vmatprep.subr.bf16.mxu0 %v4577_v2 }
 0x3f4   :  { %4301 = vmatpush3.bf16.msra.mxu0 %v5160_v39 }
 0x3f5   :  { %4302 = vmatprep.subr.bf16.mxu0 %v4577_v2 }
 0x3f8   :  { %4304 = vmatpush3.bf16.msra.mxu0 %v5170_v44 }
 0x3f9   :  { %4305 = vmatprep.subr.bf16.mxu0 %v4577_v2 }
 0x3fc   :  { %4307 = vmatpush3.bf16.msra.mxu0 %v5180_v51 }
 0x3fd   :  { %4308 = vmatprep.subr.bf16.mxu0 %v4577_v2 }
 0x400   :  { %4310 = vmatpush3.bf16.msra.mxu0 %v5245_v17 }
 0x401   :  { %4311 = vmatprep.subr.bf16.mxu0 %v4577_v2 }
 0x404   :  { %4313 = vmatpush3.bf16.msra.mxu0 %v5256_v38 }
 0x405   :  { %4314 = vmatprep.subr.bf16.mxu0 %v4577_v2 }
 0x408   :  { %4316 = vmatpush3.bf16.msra.mxu0 %v5266_v49 }
 0x409   :  { %4317 = vmatprep.subr.bf16.mxu0 %v4577_v2 }
 0x47e   :  { %v1149_v58 = vpop.f32.mrb[14].mxu0 }
 0x47f   :  { %v1153_v62 = vadd.f32 %v1149_v58, %v150_v53  ;;  %v3377_v0 = vpop.f32.mrb[15].mxu0  ;;  %v5416_v53 = vpack.c.bf16 %v1531_v45, %v1530_v42  ;;  %v2358_v42 = vld [vmem:[%s5676_s7 + $0x78] sm:$0xff] }
 0x480   :  { %v1533_v0 = vld [vmem:[%s5674_s5 + $0x68] sm:$0xff]  ;;  %v4513_v45 = vpack.c.bf16 %v2358_v42, %v2357_v22 }
 0x481   :  { %4558 = vtanh.f32 %v1153_v62  ;;  %v1532_v62 = vld [vmem:[%s5674_s5 + $0x60] sm:$0xff] }
 0x482   :  { %v5427_v13 = vpack.c.bf16 %v1533_v0, %v1532_v62 }
 0x48b   :  { %v4559_v14 = vpop.eup %4558 }
 0x48c   :  { %3481 = vmatmul.mubr.f32.vlgmr.msra.gmra.mrb[8].mxu1 %v4559_v14 }
 0x48d   :  { %4247 = vmatpush3.bf16.msra.mxu1 %v5283_v12  ;;  %3515 = vmatprep.mubr.msk.f32.mxu1 %vm4578_vm0, %v4579_v4 }
 0x48e   :  { %4248 = vmatprep.subr.bf16.mxu1 %v4577_v2 }
 0x491   :  { %4250 = vmatpush3.bf16.msra.mxu1 %v5292_v16 }
 0x492   :  { %4251 = vmatprep.subr.bf16.mxu1 %v4577_v2 }
 0x495   :  { %4253 = vmatpush3.bf16.msra.mxu1 %v5304_v24 }
 0x496   :  { %4254 = vmatprep.subr.bf16.mxu1 %v4577_v2 }
 0x499   :  { %4256 = vmatpush3.bf16.msra.mxu1 %v5314_v21 }
 0x49a   :  { %4257 = vmatprep.subr.bf16.mxu1 %v4577_v2 }
 0x49d   :  { %4259 = vmatpush3.bf16.msra.mxu1 %v5324_v40 }
 0x49e   :  { %4260 = vmatprep.subr.bf16.mxu1 %v4577_v2 }
 0x4a1   :  { %4262 = vmatpush3.bf16.msra.mxu1 %v5334_v27 }
 0x4a2   :  { %4263 = vmatprep.subr.bf16.mxu1 %v4577_v2 }
 0x4a5   :  { %4265 = vmatpush3.bf16.msra.mxu1 %v5344_v32 }
 0x4a6   :  { %4266 = vmatprep.subr.bf16.mxu1 %v4577_v2 }
 0x4a9   :  { %4268 = vmatpush3.bf16.msra.mxu1 %v5354_v41 }
 0x4aa   :  { %4269 = vmatprep.subr.bf16.mxu1 %v4577_v2 }
 0x4ac   :  { %3516 = vmatmul.mubr.f32.vlgmr.msra.gmra.mrb[10].mxu1 %v4559_v14  ;;  %v1535_v14 = vld [vmem:[%s5674_s5 + $0x78] sm:$0xff] }
 0x4ad   :  { %4271 = vmatpush3.bf16.msra.mxu1 %v5364_v48  ;;  %3550 = vmatprep.mubr.msk.f32.mxu1 %vm4578_vm0, %v4579_v4  ;;  %v5437_v18 = vpack.c.bf16 %v1535_v14, %v1534_v6 }
 0x4ae   :  { %4272 = vmatprep.subr.bf16.mxu1 %v4577_v2 }
 0x4b1   :  { %4274 = vmatpush3.bf16.msra.mxu1 %v5374_v56 }
 0x4b2   :  { %4275 = vmatprep.subr.bf16.mxu1 %v4577_v2 }
 0x4b5   :  { %4277 = vmatpush3.bf16.msra.mxu1 %v5386_v54 }
 0x4b6   :  { %4278 = vmatprep.subr.bf16.mxu1 %v4577_v2 }
 0x4b9   :  { %4280 = vmatpush3.bf16.msra.mxu1 %v5396_v3 }
 0x4ba   :  { %4281 = vmatprep.subr.bf16.mxu1 %v4577_v2 }
 0x4bd   :  { %4283 = vmatpush3.bf16.msra.mxu1 %v5406_v33 }
 0x4be   :  { %v1330_v58 = vpop.f32.mrb[16].mxu0  ;;  %4284 = vmatprep.subr.bf16.mxu1 %v4577_v2 }
 0x4bf   :  { %v4520_v1 = vadd.f32 %v5058_v20, %v1330_v58  ;;  %v3447_v11 = vpop.f32.mrb[17].mxu0  ;;  %v4576_v58 = vld [vmem:[%s5673_s3] ss:$0 sm:$0xff] }
 0x4c0   :  { %v165_v62 = vadd.f32 %v4576_v58, %v5022_v7 }
 0x4c1   :  { %4560 = vtanh.f32 %v4520_v1  ;;  %4286 = vmatpush3.bf16.msra.mxu1 %v5416_v53 }
 0x4c2   :  { %4287 = vmatprep.subr.bf16.mxu1 %v4577_v2 }
 0x4c5   :  { %4289 = vmatpush3.bf16.msra.mxu1 %v5427_v13 }
 0x4c6   :  { %4290 = vmatprep.subr.bf16.mxu1 %v4577_v2 }
 0x4c9   :  { %4292 = vmatpush3.bf16.msra.mxu1 %v5437_v18 }
 0x4ca   :  { %4365 = vmatprep.subr.bf16.mxu1 %v4577_v2 }
 0x4cb   :  { %v5442_v20 = vpop.eup %4560 }
 0x4cc   :  { %3551 = vmatmul.mubr.f32.vlgmr.msra.gmra.mrb[10].mxu1 %v5442_v20 }
 0x4cd   :  { %4367 = vmatpush3.bf16.msra.mxu1 %v5144_v31  ;;  %3690 = vmatprep.mubr.msk.f32.mxu1 %vm4578_vm0, %v4579_v4  ;;  %v155_v31 = vadd.f32 %v5018_v5, %v4890_v23  ;;  %v5496_v5 = vld [vmem:[%s5675_s6] ss:$0 sm:$0xff] }
 0x4ce   :  { %4368 = vmatprep.subr.bf16.mxu1 %v4577_v2 }
 0x4d1   :  { %4370 = vmatpush3.bf16.msra.mxu1 %v5150_v35 }
 0x4d2   :  { %4371 = vmatprep.subr.bf16.mxu1 %v4577_v2 }
 0x4d5   :  { %4373 = vmatpush3.bf16.msra.mxu1 %v5160_v39 }
 0x4d6   :  { %4374 = vmatprep.subr.bf16.mxu1 %v4577_v2 }
 0x4d9   :  { %4376 = vmatpush3.bf16.msra.mxu1 %v5170_v44 }
 0x4da   :  { %4377 = vmatprep.subr.bf16.mxu1 %v4577_v2 }
 0x4dd   :  { %4379 = vmatpush3.bf16.msra.mxu1 %v5180_v51 }
 0x4de   :  { %4380 = vmatprep.subr.bf16.mxu1 %v4577_v2 }
 0x4e1   :  { %4382 = vmatpush3.bf16.msra.mxu1 %v5245_v17 }
 0x4e2   :  { %4383 = vmatprep.subr.bf16.mxu1 %v4577_v2 }
 0x4e5   :  { %4385 = vmatpush3.bf16.msra.mxu1 %v5256_v38 }
 0x4e6   :  { %4386 = vmatprep.subr.bf16.mxu1 %v4577_v2 }
 0x4e9   :  { %4388 = vmatpush3.bf16.msra.mxu1 %v5266_v49 }
 0x4ea   :  { %4389 = vmatprep.subr.bf16.mxu1 %v4577_v2 }
 0x55f   :  { %v1421_v35 = vpop.f32.mrb[8].mxu1 }
 0x560   :  { %v1425_v39 = vadd.f32 %v1421_v35, %v155_v31  ;;  %v3482_v44 = vpop.f32.mrb[9].mxu1 }
 0x562   :  { %4562 = vtanh.f32 %v1425_v39 }
 0x56c   :  { %v4563_v51 = vpop.eup %4562 }
 0x56d   :  { %3586 = vmatmul.mubr.f32.vlgmr.msra.gmra.mrb[18].mxu0 %v4563_v51 }
 0x56e   :  { %4319 = vmatpush3.bf16.msra.mxu0 %v5283_v12  ;;  %3620 = vmatprep.mubr.msk.f32.mxu0 %vm4578_vm0, %v4579_v4 }
 0x56f   :  { %4320 = vmatprep.subr.bf16.mxu0 %v4577_v2 }
 0x572   :  { %4322 = vmatpush3.bf16.msra.mxu0 %v5292_v16 }
 0x573   :  { %4323 = vmatprep.subr.bf16.mxu0 %v4577_v2 }
 0x576   :  { %4325 = vmatpush3.bf16.msra.mxu0 %v5304_v24 }
 0x577   :  { %4326 = vmatprep.subr.bf16.mxu0 %v4577_v2 }
 0x57a   :  { %4328 = vmatpush3.bf16.msra.mxu0 %v5314_v21 }
 0x57b   :  { %4329 = vmatprep.subr.bf16.mxu0 %v4577_v2 }
 0x57e   :  { %4331 = vmatpush3.bf16.msra.mxu0 %v5324_v40 }
 0x57f   :  { %4332 = vmatprep.subr.bf16.mxu0 %v4577_v2 }
 0x582   :  { %4334 = vmatpush3.bf16.msra.mxu0 %v5334_v27 }
 0x583   :  { %4335 = vmatprep.subr.bf16.mxu0 %v4577_v2 }
 0x586   :  { %4337 = vmatpush3.bf16.msra.mxu0 %v5344_v32 }
 0x587   :  { %4338 = vmatprep.subr.bf16.mxu0 %v4577_v2 }
 0x58a   :  { %4340 = vmatpush3.bf16.msra.mxu0 %v5354_v41 }
 0x58b   :  { %4341 = vmatprep.subr.bf16.mxu0 %v4577_v2 }
 0x58d   :  { %3621 = vmatmul.mubr.f32.vlgmr.msra.gmra.mrb[20].mxu0 %v4563_v51 }
 0x58e   :  { %4343 = vmatpush3.bf16.msra.mxu0 %v5364_v48  ;;  %3655 = vmatprep.mubr.msk.f32.mxu0 %vm4578_vm0, %v4579_v4 }
 0x58f   :  { %4344 = vmatprep.subr.bf16.mxu0 %v4577_v2 }
 0x592   :  { %4346 = vmatpush3.bf16.msra.mxu0 %v5374_v56 }
 0x593   :  { %4347 = vmatprep.subr.bf16.mxu0 %v4577_v2 }
 0x596   :  { %4349 = vmatpush3.bf16.msra.mxu0 %v5386_v54 }
 0x597   :  { %4350 = vmatprep.subr.bf16.mxu0 %v4577_v2 }
 0x59a   :  { %4352 = vmatpush3.bf16.msra.mxu0 %v5396_v3 }
 0x59b   :  { %4353 = vmatprep.subr.bf16.mxu0 %v4577_v2 }
 0x59e   :  { %4355 = vmatpush3.bf16.msra.mxu0 %v5406_v33 }
 0x59f   :  { %v1602_v17 = vpop.f32.mrb[10].mxu1  ;;  %4356 = vmatprep.subr.bf16.mxu0 %v4577_v2 }
 0x5a0   :  { %v4521_v38 = vadd.f32 %v5496_v5, %v1602_v17  ;;  %v3552_v49 = vpop.f32.mrb[11].mxu1 }
 0x5a2   :  { %4564 = vtanh.f32 %v4521_v38  ;;  %4358 = vmatpush3.bf16.msra.mxu0 %v5416_v53 }
 0x5a3   :  { %4359 = vmatprep.subr.bf16.mxu0 %v4577_v2 }
 0x5a6   :  { %4361 = vmatpush3.bf16.msra.mxu0 %v5427_v13 }
 0x5a7   :  { %4362 = vmatprep.subr.bf16.mxu0 %v4577_v2 }
 0x5aa   :  { %4364 = vmatpush3.bf16.msra.mxu0 %v5437_v18 }
 0x5ab   :  { %4437 = vmatprep.subr.bf16.mxu0 %v4577_v2 }
 0x5ac   :  { %v5507_v19 = vpop.eup %4564 }
 0x5ad   :  { %3656 = vmatmul.mubr.f32.vlgmr.msra.gmra.mrb[20].mxu0 %v5507_v19 }
 0x5ae   :  { %4439 = vmatpush3.bf16.msra.mxu0 %v5283_v12  ;;  %3795 = vmatprep.mubr.msk.f32.mxu0 %vm4578_vm0, %v4579_v4 }
 0x5af   :  { %4440 = vmatprep.subr.bf16.mxu0 %v4577_v2 }
 0x5b2   :  { %4442 = vmatpush3.bf16.msra.mxu0 %v5292_v16 }
 0x5b3   :  { %4443 = vmatprep.subr.bf16.mxu0 %v4577_v2 }
 0x5b6   :  { %4445 = vmatpush3.bf16.msra.mxu0 %v5304_v24 }
 0x5b7   :  { %4446 = vmatprep.subr.bf16.mxu0 %v4577_v2 }
 0x5ba   :  { %4448 = vmatpush3.bf16.msra.mxu0 %v5314_v21 }
 0x5bb   :  { %4449 = vmatprep.subr.bf16.mxu0 %v4577_v2 }
 0x5be   :  { %4451 = vmatpush3.bf16.msra.mxu0 %v5324_v40 }
 0x5bf   :  { %4452 = vmatprep.subr.bf16.mxu0 %v4577_v2 }
 0x5c2   :  { %4454 = vmatpush3.bf16.msra.mxu0 %v5334_v27 }
 0x5c3   :  { %4455 = vmatprep.subr.bf16.mxu0 %v4577_v2 }
 0x5c6   :  { %4457 = vmatpush3.bf16.msra.mxu0 %v5344_v32 }
 0x5c7   :  { %4458 = vmatprep.subr.bf16.mxu0 %v4577_v2 }
 0x5ca   :  { %4460 = vmatpush3.bf16.msra.mxu0 %v5354_v41 }
 0x5cb   :  { %4461 = vmatprep.subr.bf16.mxu0 %v4577_v2 }
 0x640   :  { %v1693_v15 = vpop.f32.mrb[18].mxu0 }
 0x641   :  { %v1697_v28 = vadd.f32 %v1693_v15, %v160_v9  ;;  %v3587_v34 = vpop.f32.mrb[19].mxu0 }
 0x643   :  { %4566 = vtanh.f32 %v1697_v28 }
 0x64d   :  { %v4567_v46 = vpop.eup %4566 }
 0x64e   :  { %3691 = vmatmul.mubr.f32.vlgmr.msra.gmra.mrb[12].mxu1 %v4567_v46 }
 0x64f   :  { %4391 = vmatpush3.bf16.msra.mxu1 %v5283_v12  ;;  %3725 = vmatprep.mubr.msk.f32.mxu1 %vm4578_vm0, %v4579_v4 }
 0x650   :  { %4392 = vmatprep.subr.bf16.mxu1 %v4577_v2 }
 0x653   :  { %4394 = vmatpush3.bf16.msra.mxu1 %v5292_v16  ;;  %v2343_v16 = vld [vmem:[%s5676_s7] sm:$0xff] }
 0x654   :  { %4395 = vmatprep.subr.bf16.mxu1 %v4577_v2 }
 0x657   :  { %4397 = vmatpush3.bf16.msra.mxu1 %v5304_v24  ;;  %v2344_v24 = vld [vmem:[%s5676_s7 + $0x8] sm:$0xff] }
 0x658   :  { %4398 = vmatprep.subr.bf16.mxu1 %v4577_v2 }
 0x65b   :  { %4400 = vmatpush3.bf16.msra.mxu1 %v5314_v21  ;;  %v4485_v21 = vpack.c.bf16 %v2344_v24, %v2343_v16 }
 0x65c   :  { %4401 = vmatprep.subr.bf16.mxu1 %v4577_v2 }
 0x65f   :  { %4403 = vmatpush3.bf16.msra.mxu1 %v5324_v40  ;;  %v2345_v40 = vld [vmem:[%s5676_s7 + $0x10] sm:$0xff] }
 0x660   :  { %4404 = vmatprep.subr.bf16.mxu1 %v4577_v2 }
 0x663   :  { %4406 = vmatpush3.bf16.msra.mxu1 %v5334_v27  ;;  %v4489_v27 = vpack.c.bf16 %v2346_v50, %v2345_v40 }
 0x664   :  { %4407 = vmatprep.subr.bf16.mxu1 %v4577_v2 }
 0x667   :  { %4409 = vmatpush3.bf16.msra.mxu1 %v5344_v32  ;;  %v2348_v32 = vld [vmem:[%s5676_s7 + $0x28] sm:$0xff] }
 0x668   :  { %4410 = vmatprep.subr.bf16.mxu1 %v4577_v2  ;;  %v4493_v36 = vpack.c.bf16 %v2348_v32, %v2347_v30 }
 0x66b   :  { %4412 = vmatpush3.bf16.msra.mxu1 %v5354_v41  ;;  %v2350_v41 = vld [vmem:[%s5676_s7 + $0x38] sm:$0xff] }
 0x66c   :  { %4413 = vmatprep.subr.bf16.mxu1 %v4577_v2  ;;  %v4497_v43 = vpack.c.bf16 %v2350_v41, %v2349_v37 }
 0x66e   :  { %3726 = vmatmul.mubr.f32.vlgmr.msra.gmra.mrb[14].mxu1 %v4567_v46 }
 0x66f   :  { %4415 = vmatpush3.bf16.msra.mxu1 %v5364_v48  ;;  %3760 = vmatprep.mubr.msk.f32.mxu1 %vm4578_vm0, %v4579_v4 }
 0x670   :  { %4416 = vmatprep.subr.bf16.mxu1 %v4577_v2 }
 0x673   :  { %4418 = vmatpush3.bf16.msra.mxu1 %v5374_v56 }
 0x674   :  { %4419 = vmatprep.subr.bf16.mxu1 %v4577_v2 }
 0x677   :  { %4421 = vmatpush3.bf16.msra.mxu1 %v5386_v54 }
 0x678   :  { %4422 = vmatprep.subr.bf16.mxu1 %v4577_v2 }
 0x67b   :  { %4424 = vmatpush3.bf16.msra.mxu1 %v5396_v3 }
 0x67c   :  { %4425 = vmatprep.subr.bf16.mxu1 %v4577_v2 }
 0x67f   :  { %4427 = vmatpush3.bf16.msra.mxu1 %v5406_v33 }
 0x680   :  { %v1874_v23 = vpop.f32.mrb[20].mxu0  ;;  %4428 = vmatprep.subr.bf16.mxu1 %v4577_v2 }
 0x681   :  { %v4522_v8 = vadd.f32 %v5496_v5, %v1874_v23  ;;  %v3657_v12 = vpop.f32.mrb[21].mxu0 }
 0x683   :  { %4568 = vtanh.f32 %v4522_v8  ;;  %4430 = vmatpush3.bf16.msra.mxu1 %v5416_v53 }
 0x684   :  { %4431 = vmatprep.subr.bf16.mxu1 %v4577_v2 }
 0x687   :  { %4433 = vmatpush3.bf16.msra.mxu1 %v5427_v13 }
 0x688   :  { %4434 = vmatprep.subr.bf16.mxu1 %v4577_v2 }
 0x68b   :  { %4436 = vmatpush3.bf16.msra.mxu1 %v5437_v18 }
 0x68c   :  { %4486 = vmatprep.subr.bf16.mxu1 %v4485_v21 }
 0x68d   :  { %v4569_v29 = vpop.eup %4568 }
 0x68e   :  { %3761 = vmatmul.mubr.f32.vlgmr.msra.gmra.mrb[14].mxu1 %v4569_v29 }
 0x68f   :  { %4488 = vmatpush3.bf16.msra.mxu1 %v4485_v21  ;;  %3865 = vmatprep.mubr.f32.mxu1 %v5070_v25  ;;  %v2352_v25 = vld [vmem:[%s5676_s7 + $0x48] sm:$0xff] }
 0x690   :  { %4490 = vmatprep.subr.bf16.mxu1 %v4489_v27  ;;  %v4501_v52 = vpack.c.bf16 %v2352_v25, %v2351_v47 }
 0x693   :  { %4492 = vmatpush3.bf16.msra.mxu1 %v4489_v27 }
 0x694   :  { %4494 = vmatprep.subr.bf16.mxu1 %v4493_v36 }
 0x697   :  { %4496 = vmatpush3.bf16.msra.mxu1 %v4493_v36 }
 0x698   :  { %4498 = vmatprep.subr.bf16.mxu1 %v4497_v43 }
 0x69b   :  { %4500 = vmatpush3.bf16.msra.mxu1 %v4497_v43 }
 0x69c   :  { %4502 = vmatprep.subr.bf16.mxu1 %v4501_v52 }
 0x69f   :  { %4504 = vmatpush3.bf16.msra.mxu1 %v4501_v52 }
 0x6a0   :  { %4506 = vmatprep.subr.bf16.mxu1 %v4505_v61 }
 0x6a3   :  { %4508 = vmatpush3.bf16.msra.mxu1 %v4505_v61 }
 0x6a4   :  { %4510 = vmatprep.subr.bf16.mxu1 %v4509_v10 }
 0x6a7   :  { %4512 = vmatpush3.bf16.msra.mxu1 %v4509_v10 }
 0x6a8   :  { %4514 = vmatprep.subr.bf16.mxu1 %v4513_v45 }
 0x6ab   :  { %4516 = vmatpush3.bf16.msra.mxu1 %v4513_v45 }
 0x6ae   :  { %3866 = vmatmul.mubr.f32.vlgmr.msra.gmra.mrb[16].mxu1 %v5130_v26 }
 0x6af   :  { %3868 = vmatprep.mubr.f32.mxu1 %v5224_v63 }
 0x6b2   :  { %3869 = vmatmul.mubr.f32.gmra.mrb[18].mxu1 %v5442_v20 }
 0x6b3   :  { %3871 = vmatprep.mubr.f32.mxu1 %v5507_v19 }
 0x6b6   :  { %3872 = vmatmul.mubr.f32.gmra.mrb[20].mxu1 %v4569_v29 }
 0x721   :  { %v1965_v0 = vpop.f32.mrb[12].mxu1 }
 0x722   :  { %v1969_v1 = vadd.f32 %v1965_v0, %v165_v62  ;;  %v3692_v11 = vpop.f32.mrb[13].mxu1 }
 0x724   :  { %4570 = vtanh.f32 %v1969_v1 }
 0x72e   :  { %v4571_v6 = vpop.eup %4570 }
 0x72f   :  { %3796 = vmatmul.mubr.f32.vlgmr.msra.gmra.mrb[22].mxu0 %v4571_v6 }
 0x730   :  { %4463 = vmatpush3.bf16.msra.mxu0 %v5364_v48  ;;  %3830 = vmatprep.mubr.msk.f32.mxu0 %vm4578_vm0, %v4579_v4  ;;  %v2492_v48 = vld [vmem:[%s5677_s8] ss:$0 sm:$0xff] }
 0x731   :  { %4464 = vmatprep.subr.bf16.mxu0 %v4577_v2 }
 0x734   :  { %4466 = vmatpush3.bf16.msra.mxu0 %v5374_v56 }
 0x735   :  { %4467 = vmatprep.subr.bf16.mxu0 %v4577_v2 }
 0x738   :  { %4469 = vmatpush3.bf16.msra.mxu0 %v5386_v54 }
 0x739   :  { %4470 = vmatprep.subr.bf16.mxu0 %v4577_v2 }
 0x73c   :  { %4472 = vmatpush3.bf16.msra.mxu0 %v5396_v3 }
 0x73d   :  { %4473 = vmatprep.subr.bf16.mxu0 %v4577_v2 }
 0x740   :  { %4475 = vmatpush3.bf16.msra.mxu0 %v5406_v33 }
 0x741   :  { %4476 = vmatprep.subr.bf16.mxu0 %v4577_v2 }
 0x744   :  { %4478 = vmatpush3.bf16.msra.mxu0 %v5416_v53 }
 0x745   :  { %4479 = vmatprep.subr.bf16.mxu0 %v4577_v2 }
 0x748   :  { %4481 = vmatpush3.bf16.msra.mxu0 %v5427_v13 }
 0x749   :  { %4482 = vmatprep.subr.bf16.mxu0 %v4577_v2 }
 0x74c   :  { %4484 = vmatpush3.bf16.msra.mxu0 %v5437_v18 }
 0x761   :  { %v2146_v4 = vpop.f32.mrb[14].mxu1 }
 0x762   :  { %v4523_v7 = vadd.f32 %v5496_v5, %v2146_v4  ;;  %v3762_v26 = vpop.f32.mrb[15].mxu1 }
 0x764   :  { %4572 = vtanh.f32 %v4523_v7 }
 0x76e   :  { %v4573_v63 = vpop.eup %4572 }
 0x76f   :  { %3831 = vmatmul.mubr.f32.vlgmr.msra.gmra.mrb[22].mxu0 %v4573_v63  ;;  %3874 = vmatprep.mubr.f32.mxu1 %v4573_v63 }
 0x781   :  { %v3867_v56 = vpop.f32.mrb[16].mxu1 }
 0x782   :  { %v2438_v54 = vadd.f32 %v3867_v56, %v2492_v48  ;;  %v2432_v3 = vpop.f32.mrb[17].mxu1 }
 0x783   :  { %v2433_v33 = vadd.f32 %v2492_v48, %v2432_v3 }
 0x784   :  { %2472 = vst [vmem:[%s5678_s9 + $0x8] sm:$0xff] %v2438_v54 }
 0x785   :  { %2471 = vst [vmem:[%s5678_s9] sm:$0xff] %v2433_v33  ;;  %v3870_v2 = vpop.f32.mrb[18].mxu1 }
 0x786   :  { %v2448_v53 = vadd.f32 %v3870_v2, %v2492_v48  ;;  %v2442_v13 = vpop.f32.mrb[19].mxu1 }
 0x787   :  { %v2443_v14 = vadd.f32 %v2492_v48, %v2442_v13 }
 0x788   :  { %2474 = vst [vmem:[%s5678_s9 + $0x18] sm:$0xff] %v2448_v53 }
 0x789   :  { %2473 = vst [vmem:[%s5678_s9 + $0x10] sm:$0xff] %v2443_v14  ;;  %v3873_v18 = vpop.f32.mrb[20].mxu1 }
 0x78a   :  { %v2458_v20 = vadd.f32 %v3873_v18, %v2492_v48  ;;  %v2452_v31 = vpop.f32.mrb[21].mxu1 }
 0x78b   :  { %v2453_v35 = vadd.f32 %v2492_v48, %v2452_v31 }
 0x78c   :  { %2476 = vst [vmem:[%s5678_s9 + $0x28] sm:$0xff] %v2458_v20 }
 0x78d   :  { %2475 = vst [vmem:[%s5678_s9 + $0x20] sm:$0xff] %v2453_v35 }
 0x842   :  { %v2328_v39 = vpop.f32.mrb[22].mxu0 }
 0x843   :  { %v4524_v44 = vadd.f32 %v5496_v5, %v2328_v39  ;;  %v3832_v51 = vpop.f32.mrb[23].mxu0 }
 0x845   :  { %4574 = vtanh.f32 %v4524_v44 }
 0x84f   :  { %v4575_v17 = vpop.eup %4574 }
 0x850   :  { %3875 = vmatmul.mubr.f32.gmra.mrb[22].mxu1 %v4575_v17 }
 0x923   :  { %v3876_v38 = vpop.f32.mrb[22].mxu1 }
 0x924   :  { %v2468_v49 = vadd.f32 %v3876_v38, %v2492_v48  ;;  %v2462_v19 = vpop.f32.mrb[23].mxu1 }
 0x925   :  { %v2463_v9 = vadd.f32 %v2492_v48, %v2462_v19 }
 0x926   :  { %2478 = vst [vmem:[%s5678_s9 + $0x38] sm:$0xff] %v2468_v49 }
 0x927   :  { %2477 = vst [vmem:[%s5678_s9 + $0x30] sm:$0xff] %v2463_v9 }

</bundles_post_ra>
